<compile_context>
chip_gen: v5e
topology: v5e:2x2
jax: 0.10.0
libtpu: 0.0.40
codegen_flags: <defaults>
</compile_context>

<pallas_src>
import jax
import jax.numpy as jnp
from jax.experimental import pallas as pl
from jax.experimental.pallas import tpu as pltpu


# ------------------------- fused GRU + fc kernel ----------------------------
def make_fused_gru_kernel(n_layers, T, Bc, H):
    """Kernel closure.  Bc is the per-grid-step (sublane-padded) batch chunk."""
    n_in = 4 + 4 * n_layers  # x, h0, per-layer (wih, whh, bi, bhn), fcw, fcb

    def kernel(*refs):
        x_ref, h0_ref = refs[0], refs[1]
        layer_refs = [refs[2 + 4 * l: 6 + 4 * l] for l in range(n_layers)]
        fcw_ref, fcb_ref = refs[n_in - 2], refs[n_in - 1]
        y_ref, hT_ref = refs[n_in], refs[n_in + 1]
        gi_scr = refs[n_in + 2]     # (T*Bc, 3H): fused r|z|n input preacts
        seq_scr = refs[n_in + 3]    # (T*Bc, H) : current layer output sequence

        for l in range(n_layers):
            wih_ref, whh_ref, bi_ref, bhn_ref = layer_refs[l]

            # ---- hoisted input projection: one matmul for all timesteps ----
            src = x_ref[...] if l == 0 else seq_scr[...]          # (T*Bc, Din)
            gi_scr[...] = (jnp.dot(src, wih_ref[...],
                                   preferred_element_type=jnp.float32)
                           + bi_ref[...])                          # (T*Bc, 3H)

            # ---- serial recurrence: one fused (Bc,H)x(H,3H) dot per step ----
            whh = whh_ref[...]          # (H, 3H), hoisted (small)
            bhn = bhn_ref[...]          # (1, H)
            h = h0_ref[l]               # (Bc, H)
            # T small & static -> full unroll.  For large T use lax.fori_loop
            # with pl.ds(t * Bc, Bc) starts wrapped in pl.multiple_of.
            for t in range(T):
                o = t * Bc              # static, multiple of 8 -> aligned
                gh = jnp.dot(h, whh, preferred_element_type=jnp.float32)
                gi = gi_scr[o:o + Bc, :]
                r = jax.nn.sigmoid(gi[:, :H] + gh[:, :H])
                z = jax.nn.sigmoid(gi[:, H:2 * H] + gh[:, H:2 * H])
                n = jnp.tanh(gi[:, 2 * H:] + r * (gh[:, 2 * H:] + bhn))
                h = (1.0 - z) * n + z * h
                seq_scr[o:o + Bc, :] = h        # VMEM only; HBM written once
            hT_ref[l] = h.astype(hT_ref.dtype)

        # ---- fused output projection over the whole sequence (lane-dense) ----
        y_ref[...] = (jnp.dot(seq_scr[...], fcw_ref[...],
                              preferred_element_type=jnp.float32)
                      + fcb_ref[...]).astype(y_ref.dtype)

    return kernel


# ------------------------------- full forward -------------------------------
def gru_forward(x_btd, gru_params, h0_param, fc_w, fc_b):
    """Mirrors GRU.forward(x, h=None).  x_btd: (B, T, n_data), batch_first."""
    B, T, D = x_btd.shape
    n_layers, _, H = h0_param.shape
    N_out = fc_w.shape[0]

    # Batch chunking: >=2 chunks lets v7x's two TensorCores run in parallel
    # (dimension_semantics=("parallel",)); tiny batches stay on one chunk.
    n_chunks = 2 if B >= 16 else 1
    Bc = -(-B // (8 * n_chunks)) * 8          # per-chunk batch, sublane-aligned
    B_pad = Bc * n_chunks
    Dout = -(-N_out // 128) * 128             # lane-dense (unmasked) y stores

    # ---- weight prep: gate-fused, transposed, bias-folded --------------------
    flat_params = []
    for (w_ih, w_hh, b_ih, b_hh) in gru_params:
        bi = b_ih + jnp.concatenate(
            [b_hh[:2 * H], jnp.zeros((H,), b_hh.dtype)])   # fold b_hr, b_hz
        flat_params += [
            jnp.transpose(w_ih),          # (Din, 3H)  columns = r|z|n
            jnp.transpose(w_hh),          # (H, 3H)
            bi.reshape(1, 3 * H),         # b_ih (+ b_hr, b_hz folded)
            b_hh[2 * H:].reshape(1, H),   # b_hn stays inside r*(...)
        ]
    fcw_pad = jnp.zeros((H, Dout), jnp.float32).at[:, :N_out].set(jnp.transpose(fc_w))
    fcb_pad = jnp.zeros((1, Dout), jnp.float32).at[:, :N_out].set(fc_b)

    # ---- input prep: per-chunk time-major flattening --------------------------
    # (small wrapper-side transpose; at production T*B index x via BlockSpec)
    x_p = jnp.pad(x_btd, ((0, B_pad - B), (0, 0), (0, 0)))
    x_chunks = (x_p.reshape(n_chunks, Bc, T, D)
                .transpose(0, 2, 1, 3)
                .reshape(n_chunks, T * Bc, D))
    h0_b = jnp.broadcast_to(h0_param, (n_layers, B_pad, H))   # h0.expand(-1,B,-1)

    # ---- specs ----------------------------------------------------------------
    in_specs = [
        pl.BlockSpec((None, T * Bc, D), lambda c: (c, 0, 0)),     # x (per chunk)
        pl.BlockSpec((n_layers, Bc, H), lambda c: (0, c, 0)),     # h0 (per chunk)
    ]
    for l in range(n_layers):
        d_in = D if l == 0 else H
        in_specs += [
            pl.BlockSpec((d_in, 3 * H), lambda c: (0, 0)),        # W_ih^T
            pl.BlockSpec((H, 3 * H), lambda c: (0, 0)),           # W_hh^T
            pl.BlockSpec((1, 3 * H), lambda c: (0, 0)),           # b_i folded
            pl.BlockSpec((1, H), lambda c: (0, 0)),               # b_hn
        ]
    in_specs += [
        pl.BlockSpec((H, Dout), lambda c: (0, 0)),                # fc_w^T padded
        pl.BlockSpec((1, Dout), lambda c: (0, 0)),                # fc_b padded
    ]
    out_specs = (
        pl.BlockSpec((None, T * Bc, Dout), lambda c: (c, 0, 0)),  # y (per chunk)
        pl.BlockSpec((n_layers, Bc, H), lambda c: (0, c, 0)),     # h_T (per chunk)
    )

    kernel = make_fused_gru_kernel(n_layers, T, Bc, H)
    y_chunks, hT = pl.pallas_call(
        kernel,
        grid=(n_chunks,),
        in_specs=in_specs,
        out_specs=out_specs,
        out_shape=(jax.ShapeDtypeStruct((n_chunks, T * Bc, Dout), jnp.float32),
                   jax.ShapeDtypeStruct((n_layers, B_pad, H), jnp.float32)),
        scratch_shapes=[pltpu.VMEM((T * Bc, 3 * H), jnp.float32),   # fused gi
                        pltpu.VMEM((T * Bc, H), jnp.float32)],      # layer seq
        compiler_params=pltpu.CompilerParams(
            dimension_semantics=("parallel",)),
    )(x_chunks, h0_b, *flat_params, fcw_pad, fcb_pad)

    # ---- wrapper-side unpack (tiny at these shapes) ---------------------------
    y = (y_chunks.reshape(n_chunks, T, Bc, Dout)
         .transpose(0, 2, 1, 3)
         .reshape(B_pad, T, Dout))[:B, :, :N_out]                 # (B, T, n_data)
    h_out = hT[:, :B]                                             # (L, B, H)
    pre_normalized = y[:, :, :D]
    out3 = jnp.concatenate([pre_normalized, y[:, :, D:]], axis=2)
    return y, h_out, out3


# --------------------------- pure-JAX reference ------------------------------
def gru_forward_ref(x_btd, gru_params, h0_param, fc_w, fc_b):
    B, T, D = x_btd.shape
    n_layers, _, H = h0_param.shape
    h_init = jnp.broadcast_to(h0_param, (n_layers, B, H))
    x = x_btd
    h_finals = []
    for l in range(n_layers):
        w_ih, w_hh, b_ih, b_hh = gru_params[l]

        def step(h, x_t):
            gi = x_t @ w_ih.T + b_ih
            gh = h @ w_hh.T + b_hh
            r = jax.nn.sigmoid(gi[:, :H] + gh[:, :H])
            z = jax.nn.sigmoid(gi[:, H:2 * H] + gh[:, H:2 * H])
            n = jnp.tanh(gi[:, 2 * H:] + r * gh[:, 2 * H:])
            h_new = (1.0 - z) * n + z * h
            return h_new, h_new

        hT, ys = jax.lax.scan(step, h_init[l], jnp.swapaxes(x, 0, 1))
        x = jnp.swapaxes(ys, 0, 1)
        h_finals.append(hT)
    y = x @ fc_w.T + fc_b
    return y, jnp.stack(h_finals, axis=0), y


# ----------------------------------- main ------------------------------------
if __name__ == "__main__":
    # config
    n_data = 16          # input_shape
    n_layers = 2
    h_size = 32
    B, T = 2, 8

    key = jax.random.PRNGKey(0)
    keys = jax.random.split(key, 4 + 4 * n_layers)

    k = 1.0 / jnp.sqrt(h_size)
    gru_params = []
    for l in range(n_layers):
        d_in = n_data if l == 0 else h_size
        kk = keys[4 * l:4 * l + 4]
        w_ih = jax.random.uniform(kk[0], (3 * h_size, d_in), jnp.float32, -k, k)
        w_hh = jax.random.uniform(kk[1], (3 * h_size, h_size), jnp.float32, -k, k)
        b_ih = jax.random.uniform(kk[2], (3 * h_size,), jnp.float32, -k, k)
        b_hh = jax.random.uniform(kk[3], (3 * h_size,), jnp.float32, -k, k)
        gru_params.append((w_ih, w_hh, b_ih, b_hh))

    h0_param = 0.01 * jax.random.normal(keys[-4], (n_layers, 1, h_size), jnp.float32)
    kf = 1.0 / jnp.sqrt(h_size)
    fc_w = jax.random.uniform(keys[-3], (n_data, h_size), jnp.float32, -kf, kf)
    fc_b = jax.random.uniform(keys[-2], (n_data,), jnp.float32, -kf, kf)

    x = jax.random.normal(keys[-1], (B, T, n_data), jnp.float32)

    y, h, out3 = gru_forward(x, gru_params, h0_param, fc_w, fc_b)
    jax.block_until_ready((y, h, out3))

    y_ref, h_ref, out3_ref = gru_forward_ref(x, gru_params, h0_param, fc_w, fc_b)
    assert y.shape == (B, T, n_data) and h.shape == (n_layers, B, h_size)
    assert out3.shape == (B, T, n_data)
    assert jnp.allclose(y, y_ref, atol=1e-5, rtol=1e-5)
    assert jnp.allclose(h, h_ref, atol=1e-5, rtol=1e-5)
    assert jnp.allclose(out3, out3_ref, atol=1e-5, rtol=1e-5)

    print("KERNEL_OK")
</pallas_src>

<mosaic_0001>
module attributes {stable_mosaic.version = 11 : i64} {
  func.func @kernel(%arg0: i32, %arg1: memref<1x64x16xf32, #tpu.memory_space<vmem>>, %arg2: memref<2x8x32xf32, #tpu.memory_space<vmem>>, %arg3: memref<16x96xf32, #tpu.memory_space<vmem>>, %arg4: memref<32x96xf32, #tpu.memory_space<vmem>>, %arg5: memref<1x96xf32, #tpu.memory_space<vmem>>, %arg6: memref<1x32xf32, #tpu.memory_space<vmem>>, %arg7: memref<32x96xf32, #tpu.memory_space<vmem>>, %arg8: memref<32x96xf32, #tpu.memory_space<vmem>>, %arg9: memref<1x96xf32, #tpu.memory_space<vmem>>, %arg10: memref<1x32xf32, #tpu.memory_space<vmem>>, %arg11: memref<32x128xf32, #tpu.memory_space<vmem>>, %arg12: memref<1x128xf32, #tpu.memory_space<vmem>>, %arg13: memref<1x64x128xf32, #tpu.memory_space<vmem>>, %arg14: memref<2x8x32xf32, #tpu.memory_space<vmem>>, %arg15: memref<64x96xf32, #tpu.memory_space<vmem>>, %arg16: memref<64x32xf32, #tpu.memory_space<vmem>>) attributes {dimension_semantics = [#tpu.dimension_semantics<parallel>], iteration_bounds = array<i64: 1>, scalar_prefetch = 0 : i64, scratch_operands = 2 : i64, tpu.core_type = #tpu.core_type<tc>, window_params = [{transform_indices = @transform_0, window_bounds = array<i64: 1, 64, 16>}, {transform_indices = @transform_1, window_bounds = array<i64: 2, 8, 32>}, {pipeline_mode = #tpu.pipeline_mode<synchronous>, transform_indices = @transform_2, window_bounds = array<i64: 16, 96>}, {pipeline_mode = #tpu.pipeline_mode<synchronous>, transform_indices = @transform_3, window_bounds = array<i64: 32, 96>}, {pipeline_mode = #tpu.pipeline_mode<synchronous>, transform_indices = @transform_4, window_bounds = array<i64: 1, 96>}, {pipeline_mode = #tpu.pipeline_mode<synchronous>, transform_indices = @transform_5, window_bounds = array<i64: 1, 32>}, {pipeline_mode = #tpu.pipeline_mode<synchronous>, transform_indices = @transform_6, window_bounds = array<i64: 32, 96>}, {pipeline_mode = #tpu.pipeline_mode<synchronous>, transform_indices = @transform_7, window_bounds = array<i64: 32, 96>}, {pipeline_mode = #tpu.pipeline_mode<synchronous>, transform_indices = @transform_8, window_bounds = array<i64: 1, 96>}, {pipeline_mode = #tpu.pipeline_mode<synchronous>, transform_indices = @transform_9, window_bounds = array<i64: 1, 32>}, {pipeline_mode = #tpu.pipeline_mode<synchronous>, transform_indices = @transform_10, window_bounds = array<i64: 32, 128>}, {pipeline_mode = #tpu.pipeline_mode<synchronous>, transform_indices = @transform_11, window_bounds = array<i64: 1, 128>}, {transform_indices = @transform_12, window_bounds = array<i64: 1, 64, 128>}, {transform_indices = @transform_13, window_bounds = array<i64: 2, 8, 32>}]} {
    %c0 = arith.constant 0 : index
    %c0_0 = arith.constant 0 : index
    %c0_1 = arith.constant 0 : index
    %0 = vector.load %arg1[%c0, %c0_0, %c0_1] : memref<1x64x16xf32, #tpu.memory_space<vmem>>, vector<1x64x16xf32>
    %1 = vector.shape_cast %0 : vector<1x64x16xf32> to vector<64x16xf32>
    %c0_2 = arith.constant 0 : index
    %c0_3 = arith.constant 0 : index
    %2 = vector.load %arg3[%c0_2, %c0_3] : memref<16x96xf32, #tpu.memory_space<vmem>>, vector<16x96xf32>
    %cst = arith.constant dense<0.000000e+00> : vector<64x96xf32>
    %3 = tpu.matmul %1, %2, %cst {dimension_numbers = #tpu.dot_dimension_numbers<[1], [0], [0], [1], [0, 0, 1, 1], [], []>} : vector<64x16xf32>, vector<16x96xf32>, vector<64x96xf32> -> vector<64x96xf32>
    %c0_4 = arith.constant 0 : index
    %c0_5 = arith.constant 0 : index
    %4 = vector.load %arg5[%c0_4, %c0_5] : memref<1x96xf32, #tpu.memory_space<vmem>>, vector<1x96xf32>
    %5 = vector.broadcast %4 : vector<1x96xf32> to vector<64x96xf32>
    %6 = arith.addf %3, %5 : vector<64x96xf32>
    %c0_6 = arith.constant 0 : index
    %c0_7 = arith.constant 0 : index
    %7 = vector.load %arg15[%c0_6, %c0_7] : memref<64x96xf32, #tpu.memory_space<vmem>>, vector<64x96xf32>
    tpu.vector_store %arg15[%c0_6, %c0_7], %6 {strides = array<i32>} : memref<64x96xf32, #tpu.memory_space<vmem>>, vector<64x96xf32>,
    %c0_8 = arith.constant 0 : index
    %c0_9 = arith.constant 0 : index
    %8 = vector.load %arg4[%c0_8, %c0_9] : memref<32x96xf32, #tpu.memory_space<vmem>>, vector<32x96xf32>
    %c0_10 = arith.constant 0 : index
    %c0_11 = arith.constant 0 : index
    %9 = vector.load %arg6[%c0_10, %c0_11] : memref<1x32xf32, #tpu.memory_space<vmem>>, vector<1x32xf32>
    %c0_12 = arith.constant 0 : index
    %c0_13 = arith.constant 0 : index
    %c0_14 = arith.constant 0 : index
    %10 = vector.load %arg2[%c0_12, %c0_13, %c0_14] : memref<2x8x32xf32, #tpu.memory_space<vmem>>, vector<1x8x32xf32>
    %11 = vector.shape_cast %10 : vector<1x8x32xf32> to vector<8x32xf32>
    %cst_15 = arith.constant dense<0.000000e+00> : vector<8x96xf32>
    %12 = tpu.matmul %11, %8, %cst_15 {dimension_numbers = #tpu.dot_dimension_numbers<[1], [0], [0], [1], [0, 0, 1, 1], [], []>} : vector<8x32xf32>, vector<32x96xf32>, vector<8x96xf32> -> vector<8x96xf32>
    %c0_16 = arith.constant 0 : index
    %c0_17 = arith.constant 0 : index
    %13 = vector.load %arg15[%c0_16, %c0_17] : memref<64x96xf32, #tpu.memory_space<vmem>>, vector<8x96xf32>
    %14 = vector.extract_strided_slice %13 {offsets = [0, 0], sizes = [8, 32], strides = [1, 1]} : vector<8x96xf32> to vector<8x32xf32>
    %15 = vector.extract_strided_slice %12 {offsets = [0, 0], sizes = [8, 32], strides = [1, 1]} : vector<8x96xf32> to vector<8x32xf32>
    %16 = arith.addf %14, %15 : vector<8x32xf32>
    %17 = arith.negf %16 : vector<8x32xf32>
    %18 = math.exp %17 : vector<8x32xf32>
    %cst_18 = arith.constant 1.000000e+00 : f32
    %19 = vector.broadcast %cst_18 : f32 to vector<8x32xf32>
    %20 = arith.addf %19, %18 : vector<8x32xf32>
    %21 = arith.divf %19, %20 : vector<8x32xf32>
    %22 = vector.extract_strided_slice %13 {offsets = [0, 32], sizes = [8, 32], strides = [1, 1]} : vector<8x96xf32> to vector<8x32xf32>
    %23 = vector.extract_strided_slice %12 {offsets = [0, 32], sizes = [8, 32], strides = [1, 1]} : vector<8x96xf32> to vector<8x32xf32>
    %24 = arith.addf %22, %23 : vector<8x32xf32>
    %25 = arith.negf %24 : vector<8x32xf32>
    %26 = math.exp %25 : vector<8x32xf32>
    %cst_19 = arith.constant 1.000000e+00 : f32
    %27 = vector.broadcast %cst_19 : f32 to vector<8x32xf32>
    %28 = arith.addf %27, %26 : vector<8x32xf32>
    %29 = arith.divf %27, %28 : vector<8x32xf32>
    %30 = vector.extract_strided_slice %13 {offsets = [0, 64], sizes = [8, 32], strides = [1, 1]} : vector<8x96xf32> to vector<8x32xf32>
    %31 = vector.extract_strided_slice %12 {offsets = [0, 64], sizes = [8, 32], strides = [1, 1]} : vector<8x96xf32> to vector<8x32xf32>
    %32 = vector.broadcast %9 : vector<1x32xf32> to vector<8x32xf32>
    %33 = arith.addf %31, %32 : vector<8x32xf32>
    %34 = arith.mulf %21, %33 : vector<8x32xf32>
    %35 = arith.addf %30, %34 : vector<8x32xf32>
    %36 = math.tanh %35 : vector<8x32xf32>
    %cst_20 = arith.constant 1.000000e+00 : f32
    %37 = vector.broadcast %cst_20 : f32 to vector<8x32xf32>
    %38 = arith.subf %37, %29 : vector<8x32xf32>
    %39 = arith.mulf %38, %36 : vector<8x32xf32>
    %40 = arith.mulf %29, %11 : vector<8x32xf32>
    %41 = arith.addf %39, %40 : vector<8x32xf32>
    %c0_21 = arith.constant 0 : index
    %c0_22 = arith.constant 0 : index
    %42 = vector.load %arg16[%c0_21, %c0_22] : memref<64x32xf32, #tpu.memory_space<vmem>>, vector<8x32xf32>
    tpu.vector_store %arg16[%c0_21, %c0_22], %41 {strides = array<i32>} : memref<64x32xf32, #tpu.memory_space<vmem>>, vector<8x32xf32>,
    %cst_23 = arith.constant dense<0.000000e+00> : vector<8x96xf32>
    %43 = tpu.matmul %41, %8, %cst_23 {dimension_numbers = #tpu.dot_dimension_numbers<[1], [0], [0], [1], [0, 0, 1, 1], [], []>} : vector<8x32xf32>, vector<32x96xf32>, vector<8x96xf32> -> vector<8x96xf32>
    %c8 = arith.constant 8 : index
    %c0_24 = arith.constant 0 : index
    %44 = vector.load %arg15[%c8, %c0_24] : memref<64x96xf32, #tpu.memory_space<vmem>>, vector<8x96xf32>
    %45 = vector.extract_strided_slice %44 {offsets = [0, 0], sizes = [8, 32], strides = [1, 1]} : vector<8x96xf32> to vector<8x32xf32>
    %46 = vector.extract_strided_slice %43 {offsets = [0, 0], sizes = [8, 32], strides = [1, 1]} : vector<8x96xf32> to vector<8x32xf32>
    %47 = arith.addf %45, %46 : vector<8x32xf32>
    %48 = arith.negf %47 : vector<8x32xf32>
    %49 = math.exp %48 : vector<8x32xf32>
    %cst_25 = arith.constant 1.000000e+00 : f32
    %50 = vector.broadcast %cst_25 : f32 to vector<8x32xf32>
    %51 = arith.addf %50, %49 : vector<8x32xf32>
    %52 = arith.divf %50, %51 : vector<8x32xf32>
    %53 = vector.extract_strided_slice %44 {offsets = [0, 32], sizes = [8, 32], strides = [1, 1]} : vector<8x96xf32> to vector<8x32xf32>
    %54 = vector.extract_strided_slice %43 {offsets = [0, 32], sizes = [8, 32], strides = [1, 1]} : vector<8x96xf32> to vector<8x32xf32>
    %55 = arith.addf %53, %54 : vector<8x32xf32>
    %56 = arith.negf %55 : vector<8x32xf32>
    %57 = math.exp %56 : vector<8x32xf32>
    %cst_26 = arith.constant 1.000000e+00 : f32
    %58 = vector.broadcast %cst_26 : f32 to vector<8x32xf32>
    %59 = arith.addf %58, %57 : vector<8x32xf32>
    %60 = arith.divf %58, %59 : vector<8x32xf32>
    %61 = vector.extract_strided_slice %44 {offsets = [0, 64], sizes = [8, 32], strides = [1, 1]} : vector<8x96xf32> to vector<8x32xf32>
    %62 = vector.extract_strided_slice %43 {offsets = [0, 64], sizes = [8, 32], strides = [1, 1]} : vector<8x96xf32> to vector<8x32xf32>
    %63 = vector.broadcast %9 : vector<1x32xf32> to vector<8x32xf32>
    %64 = arith.addf %62, %63 : vector<8x32xf32>
    %65 = arith.mulf %52, %64 : vector<8x32xf32>
    %66 = arith.addf %61, %65 : vector<8x32xf32>
    %67 = math.tanh %66 : vector<8x32xf32>
    %cst_27 = arith.constant 1.000000e+00 : f32
    %68 = vector.broadcast %cst_27 : f32 to vector<8x32xf32>
    %69 = arith.subf %68, %60 : vector<8x32xf32>
    %70 = arith.mulf %69, %67 : vector<8x32xf32>
    %71 = arith.mulf %60, %41 : vector<8x32xf32>
    %72 = arith.addf %70, %71 : vector<8x32xf32>
    %c8_28 = arith.constant 8 : index
    %c0_29 = arith.constant 0 : index
    %73 = vector.load %arg16[%c8_28, %c0_29] : memref<64x32xf32, #tpu.memory_space<vmem>>, vector<8x32xf32>
    tpu.vector_store %arg16[%c8_28, %c0_29], %72 {strides = array<i32>} : memref<64x32xf32, #tpu.memory_space<vmem>>, vector<8x32xf32>,
    %cst_30 = arith.constant dense<0.000000e+00> : vector<8x96xf32>
    %74 = tpu.matmul %72, %8, %cst_30 {dimension_numbers = #tpu.dot_dimension_numbers<[1], [0], [0], [1], [0, 0, 1, 1], [], []>} : vector<8x32xf32>, vector<32x96xf32>, vector<8x96xf32> -> vector<8x96xf32>
    %c16 = arith.constant 16 : index
    %c0_31 = arith.constant 0 : index
    %75 = vector.load %arg15[%c16, %c0_31] : memref<64x96xf32, #tpu.memory_space<vmem>>, vector<8x96xf32>
    %76 = vector.extract_strided_slice %75 {offsets = [0, 0], sizes = [8, 32], strides = [1, 1]} : vector<8x96xf32> to vector<8x32xf32>
    %77 = vector.extract_strided_slice %74 {offsets = [0, 0], sizes = [8, 32], strides = [1, 1]} : vector<8x96xf32> to vector<8x32xf32>
    %78 = arith.addf %76, %77 : vector<8x32xf32>
    %79 = arith.negf %78 : vector<8x32xf32>
    %80 = math.exp %79 : vector<8x32xf32>
    %cst_32 = arith.constant 1.000000e+00 : f32
    %81 = vector.broadcast %cst_32 : f32 to vector<8x32xf32>
    %82 = arith.addf %81, %80 : vector<8x32xf32>
    %83 = arith.divf %81, %82 : vector<8x32xf32>
    %84 = vector.extract_strided_slice %75 {offsets = [0, 32], sizes = [8, 32], strides = [1, 1]} : vector<8x96xf32> to vector<8x32xf32>
    %85 = vector.extract_strided_slice %74 {offsets = [0, 32], sizes = [8, 32], strides = [1, 1]} : vector<8x96xf32> to vector<8x32xf32>
    %86 = arith.addf %84, %85 : vector<8x32xf32>
    %87 = arith.negf %86 : vector<8x32xf32>
    %88 = math.exp %87 : vector<8x32xf32>
    %cst_33 = arith.constant 1.000000e+00 : f32
    %89 = vector.broadcast %cst_33 : f32 to vector<8x32xf32>
    %90 = arith.addf %89, %88 : vector<8x32xf32>
    %91 = arith.divf %89, %90 : vector<8x32xf32>
    %92 = vector.extract_strided_slice %75 {offsets = [0, 64], sizes = [8, 32], strides = [1, 1]} : vector<8x96xf32> to vector<8x32xf32>
    %93 = vector.extract_strided_slice %74 {offsets = [0, 64], sizes = [8, 32], strides = [1, 1]} : vector<8x96xf32> to vector<8x32xf32>
    %94 = vector.broadcast %9 : vector<1x32xf32> to vector<8x32xf32>
    %95 = arith.addf %93, %94 : vector<8x32xf32>
    %96 = arith.mulf %83, %95 : vector<8x32xf32>
    %97 = arith.addf %92, %96 : vector<8x32xf32>
    %98 = math.tanh %97 : vector<8x32xf32>
    %cst_34 = arith.constant 1.000000e+00 : f32
    %99 = vector.broadcast %cst_34 : f32 to vector<8x32xf32>
    %100 = arith.subf %99, %91 : vector<8x32xf32>
    %101 = arith.mulf %100, %98 : vector<8x32xf32>
    %102 = arith.mulf %91, %72 : vector<8x32xf32>
    %103 = arith.addf %101, %102 : vector<8x32xf32>
    %c16_35 = arith.constant 16 : index
    %c0_36 = arith.constant 0 : index
    %104 = vector.load %arg16[%c16_35, %c0_36] : memref<64x32xf32, #tpu.memory_space<vmem>>, vector<8x32xf32>
    tpu.vector_store %arg16[%c16_35, %c0_36], %103 {strides = array<i32>} : memref<64x32xf32, #tpu.memory_space<vmem>>, vector<8x32xf32>,
    %cst_37 = arith.constant dense<0.000000e+00> : vector<8x96xf32>
    %105 = tpu.matmul %103, %8, %cst_37 {dimension_numbers = #tpu.dot_dimension_numbers<[1], [0], [0], [1], [0, 0, 1, 1], [], []>} : vector<8x32xf32>, vector<32x96xf32>, vector<8x96xf32> -> vector<8x96xf32>
    %c24 = arith.constant 24 : index
    %c0_38 = arith.constant 0 : index
    %106 = vector.load %arg15[%c24, %c0_38] : memref<64x96xf32, #tpu.memory_space<vmem>>, vector<8x96xf32>
    %107 = vector.extract_strided_slice %106 {offsets = [0, 0], sizes = [8, 32], strides = [1, 1]} : vector<8x96xf32> to vector<8x32xf32>
    %108 = vector.extract_strided_slice %105 {offsets = [0, 0], sizes = [8, 32], strides = [1, 1]} : vector<8x96xf32> to vector<8x32xf32>
    %109 = arith.addf %107, %108 : vector<8x32xf32>
    %110 = arith.negf %109 : vector<8x32xf32>
    %111 = math.exp %110 : vector<8x32xf32>
    %cst_39 = arith.constant 1.000000e+00 : f32
    %112 = vector.broadcast %cst_39 : f32 to vector<8x32xf32>
    %113 = arith.addf %112, %111 : vector<8x32xf32>
    %114 = arith.divf %112, %113 : vector<8x32xf32>
    %115 = vector.extract_strided_slice %106 {offsets = [0, 32], sizes = [8, 32], strides = [1, 1]} : vector<8x96xf32> to vector<8x32xf32>
    %116 = vector.extract_strided_slice %105 {offsets = [0, 32], sizes = [8, 32], strides = [1, 1]} : vector<8x96xf32> to vector<8x32xf32>
    %117 = arith.addf %115, %116 : vector<8x32xf32>
    %118 = arith.negf %117 : vector<8x32xf32>
    %119 = math.exp %118 : vector<8x32xf32>
    %cst_40 = arith.constant 1.000000e+00 : f32
    %120 = vector.broadcast %cst_40 : f32 to vector<8x32xf32>
    %121 = arith.addf %120, %119 : vector<8x32xf32>
    %122 = arith.divf %120, %121 : vector<8x32xf32>
    %123 = vector.extract_strided_slice %106 {offsets = [0, 64], sizes = [8, 32], strides = [1, 1]} : vector<8x96xf32> to vector<8x32xf32>
    %124 = vector.extract_strided_slice %105 {offsets = [0, 64], sizes = [8, 32], strides = [1, 1]} : vector<8x96xf32> to vector<8x32xf32>
    %125 = vector.broadcast %9 : vector<1x32xf32> to vector<8x32xf32>
    %126 = arith.addf %124, %125 : vector<8x32xf32>
    %127 = arith.mulf %114, %126 : vector<8x32xf32>
    %128 = arith.addf %123, %127 : vector<8x32xf32>
    %129 = math.tanh %128 : vector<8x32xf32>
    %cst_41 = arith.constant 1.000000e+00 : f32
    %130 = vector.broadcast %cst_41 : f32 to vector<8x32xf32>
    %131 = arith.subf %130, %122 : vector<8x32xf32>
    %132 = arith.mulf %131, %129 : vector<8x32xf32>
    %133 = arith.mulf %122, %103 : vector<8x32xf32>
    %134 = arith.addf %132, %133 : vector<8x32xf32>
    %c24_42 = arith.constant 24 : index
    %c0_43 = arith.constant 0 : index
    %135 = vector.load %arg16[%c24_42, %c0_43] : memref<64x32xf32, #tpu.memory_space<vmem>>, vector<8x32xf32>
    tpu.vector_store %arg16[%c24_42, %c0_43], %134 {strides = array<i32>} : memref<64x32xf32, #tpu.memory_space<vmem>>, vector<8x32xf32>,
    %cst_44 = arith.constant dense<0.000000e+00> : vector<8x96xf32>
    %136 = tpu.matmul %134, %8, %cst_44 {dimension_numbers = #tpu.dot_dimension_numbers<[1], [0], [0], [1], [0, 0, 1, 1], [], []>} : vector<8x32xf32>, vector<32x96xf32>, vector<8x96xf32> -> vector<8x96xf32>
    %c32 = arith.constant 32 : index
    %c0_45 = arith.constant 0 : index
    %137 = vector.load %arg15[%c32, %c0_45] : memref<64x96xf32, #tpu.memory_space<vmem>>, vector<8x96xf32>
    %138 = vector.extract_strided_slice %137 {offsets = [0, 0], sizes = [8, 32], strides = [1, 1]} : vector<8x96xf32> to vector<8x32xf32>
    %139 = vector.extract_strided_slice %136 {offsets = [0, 0], sizes = [8, 32], strides = [1, 1]} : vector<8x96xf32> to vector<8x32xf32>
    %140 = arith.addf %138, %139 : vector<8x32xf32>
    %141 = arith.negf %140 : vector<8x32xf32>
    %142 = math.exp %141 : vector<8x32xf32>
    %cst_46 = arith.constant 1.000000e+00 : f32
    %143 = vector.broadcast %cst_46 : f32 to vector<8x32xf32>
    %144 = arith.addf %143, %142 : vector<8x32xf32>
    %145 = arith.divf %143, %144 : vector<8x32xf32>
    %146 = vector.extract_strided_slice %137 {offsets = [0, 32], sizes = [8, 32], strides = [1, 1]} : vector<8x96xf32> to vector<8x32xf32>
    %147 = vector.extract_strided_slice %136 {offsets = [0, 32], sizes = [8, 32], strides = [1, 1]} : vector<8x96xf32> to vector<8x32xf32>
    %148 = arith.addf %146, %147 : vector<8x32xf32>
    %149 = arith.negf %148 : vector<8x32xf32>
    %150 = math.exp %149 : vector<8x32xf32>
    %cst_47 = arith.constant 1.000000e+00 : f32
    %151 = vector.broadcast %cst_47 : f32 to vector<8x32xf32>
    %152 = arith.addf %151, %150 : vector<8x32xf32>
    %153 = arith.divf %151, %152 : vector<8x32xf32>
    %154 = vector.extract_strided_slice %137 {offsets = [0, 64], sizes = [8, 32], strides = [1, 1]} : vector<8x96xf32> to vector<8x32xf32>
    %155 = vector.extract_strided_slice %136 {offsets = [0, 64], sizes = [8, 32], strides = [1, 1]} : vector<8x96xf32> to vector<8x32xf32>
    %156 = vector.broadcast %9 : vector<1x32xf32> to vector<8x32xf32>
    %157 = arith.addf %155, %156 : vector<8x32xf32>
    %158 = arith.mulf %145, %157 : vector<8x32xf32>
    %159 = arith.addf %154, %158 : vector<8x32xf32>
    %160 = math.tanh %159 : vector<8x32xf32>
    %cst_48 = arith.constant 1.000000e+00 : f32
    %161 = vector.broadcast %cst_48 : f32 to vector<8x32xf32>
    %162 = arith.subf %161, %153 : vector<8x32xf32>
    %163 = arith.mulf %162, %160 : vector<8x32xf32>
    %164 = arith.mulf %153, %134 : vector<8x32xf32>
    %165 = arith.addf %163, %164 : vector<8x32xf32>
    %c32_49 = arith.constant 32 : index
    %c0_50 = arith.constant 0 : index
    %166 = vector.load %arg16[%c32_49, %c0_50] : memref<64x32xf32, #tpu.memory_space<vmem>>, vector<8x32xf32>
    tpu.vector_store %arg16[%c32_49, %c0_50], %165 {strides = array<i32>} : memref<64x32xf32, #tpu.memory_space<vmem>>, vector<8x32xf32>,
    %cst_51 = arith.constant dense<0.000000e+00> : vector<8x96xf32>
    %167 = tpu.matmul %165, %8, %cst_51 {dimension_numbers = #tpu.dot_dimension_numbers<[1], [0], [0], [1], [0, 0, 1, 1], [], []>} : vector<8x32xf32>, vector<32x96xf32>, vector<8x96xf32> -> vector<8x96xf32>
    %c40 = arith.constant 40 : index
    %c0_52 = arith.constant 0 : index
    %168 = vector.load %arg15[%c40, %c0_52] : memref<64x96xf32, #tpu.memory_space<vmem>>, vector<8x96xf32>
    %169 = vector.extract_strided_slice %168 {offsets = [0, 0], sizes = [8, 32], strides = [1, 1]} : vector<8x96xf32> to vector<8x32xf32>
    %170 = vector.extract_strided_slice %167 {offsets = [0, 0], sizes = [8, 32], strides = [1, 1]} : vector<8x96xf32> to vector<8x32xf32>
    %171 = arith.addf %169, %170 : vector<8x32xf32>
    %172 = arith.negf %171 : vector<8x32xf32>
    %173 = math.exp %172 : vector<8x32xf32>
    %cst_53 = arith.constant 1.000000e+00 : f32
    %174 = vector.broadcast %cst_53 : f32 to vector<8x32xf32>
    %175 = arith.addf %174, %173 : vector<8x32xf32>
    %176 = arith.divf %174, %175 : vector<8x32xf32>
    %177 = vector.extract_strided_slice %168 {offsets = [0, 32], sizes = [8, 32], strides = [1, 1]} : vector<8x96xf32> to vector<8x32xf32>
    %178 = vector.extract_strided_slice %167 {offsets = [0, 32], sizes = [8, 32], strides = [1, 1]} : vector<8x96xf32> to vector<8x32xf32>
    %179 = arith.addf %177, %178 : vector<8x32xf32>
    %180 = arith.negf %179 : vector<8x32xf32>
    %181 = math.exp %180 : vector<8x32xf32>
    %cst_54 = arith.constant 1.000000e+00 : f32
    %182 = vector.broadcast %cst_54 : f32 to vector<8x32xf32>
    %183 = arith.addf %182, %181 : vector<8x32xf32>
    %184 = arith.divf %182, %183 : vector<8x32xf32>
    %185 = vector.extract_strided_slice %168 {offsets = [0, 64], sizes = [8, 32], strides = [1, 1]} : vector<8x96xf32> to vector<8x32xf32>
    %186 = vector.extract_strided_slice %167 {offsets = [0, 64], sizes = [8, 32], strides = [1, 1]} : vector<8x96xf32> to vector<8x32xf32>
    %187 = vector.broadcast %9 : vector<1x32xf32> to vector<8x32xf32>
    %188 = arith.addf %186, %187 : vector<8x32xf32>
    %189 = arith.mulf %176, %188 : vector<8x32xf32>
    %190 = arith.addf %185, %189 : vector<8x32xf32>
    %191 = math.tanh %190 : vector<8x32xf32>
    %cst_55 = arith.constant 1.000000e+00 : f32
    %192 = vector.broadcast %cst_55 : f32 to vector<8x32xf32>
    %193 = arith.subf %192, %184 : vector<8x32xf32>
    %194 = arith.mulf %193, %191 : vector<8x32xf32>
    %195 = arith.mulf %184, %165 : vector<8x32xf32>
    %196 = arith.addf %194, %195 : vector<8x32xf32>
    %c40_56 = arith.constant 40 : index
    %c0_57 = arith.constant 0 : index
    %197 = vector.load %arg16[%c40_56, %c0_57] : memref<64x32xf32, #tpu.memory_space<vmem>>, vector<8x32xf32>
    tpu.vector_store %arg16[%c40_56, %c0_57], %196 {strides = array<i32>} : memref<64x32xf32, #tpu.memory_space<vmem>>, vector<8x32xf32>,
    %cst_58 = arith.constant dense<0.000000e+00> : vector<8x96xf32>
    %198 = tpu.matmul %196, %8, %cst_58 {dimension_numbers = #tpu.dot_dimension_numbers<[1], [0], [0], [1], [0, 0, 1, 1], [], []>} : vector<8x32xf32>, vector<32x96xf32>, vector<8x96xf32> -> vector<8x96xf32>
    %c48 = arith.constant 48 : index
    %c0_59 = arith.constant 0 : index
    %199 = vector.load %arg15[%c48, %c0_59] : memref<64x96xf32, #tpu.memory_space<vmem>>, vector<8x96xf32>
    %200 = vector.extract_strided_slice %199 {offsets = [0, 0], sizes = [8, 32], strides = [1, 1]} : vector<8x96xf32> to vector<8x32xf32>
    %201 = vector.extract_strided_slice %198 {offsets = [0, 0], sizes = [8, 32], strides = [1, 1]} : vector<8x96xf32> to vector<8x32xf32>
    %202 = arith.addf %200, %201 : vector<8x32xf32>
    %203 = arith.negf %202 : vector<8x32xf32>
    %204 = math.exp %203 : vector<8x32xf32>
    %cst_60 = arith.constant 1.000000e+00 : f32
    %205 = vector.broadcast %cst_60 : f32 to vector<8x32xf32>
    %206 = arith.addf %205, %204 : vector<8x32xf32>
    %207 = arith.divf %205, %206 : vector<8x32xf32>
    %208 = vector.extract_strided_slice %199 {offsets = [0, 32], sizes = [8, 32], strides = [1, 1]} : vector<8x96xf32> to vector<8x32xf32>
    %209 = vector.extract_strided_slice %198 {offsets = [0, 32], sizes = [8, 32], strides = [1, 1]} : vector<8x96xf32> to vector<8x32xf32>
    %210 = arith.addf %208, %209 : vector<8x32xf32>
    %211 = arith.negf %210 : vector<8x32xf32>
    %212 = math.exp %211 : vector<8x32xf32>
    %cst_61 = arith.constant 1.000000e+00 : f32
    %213 = vector.broadcast %cst_61 : f32 to vector<8x32xf32>
    %214 = arith.addf %213, %212 : vector<8x32xf32>
    %215 = arith.divf %213, %214 : vector<8x32xf32>
    %216 = vector.extract_strided_slice %199 {offsets = [0, 64], sizes = [8, 32], strides = [1, 1]} : vector<8x96xf32> to vector<8x32xf32>
    %217 = vector.extract_strided_slice %198 {offsets = [0, 64], sizes = [8, 32], strides = [1, 1]} : vector<8x96xf32> to vector<8x32xf32>
    %218 = vector.broadcast %9 : vector<1x32xf32> to vector<8x32xf32>
    %219 = arith.addf %217, %218 : vector<8x32xf32>
    %220 = arith.mulf %207, %219 : vector<8x32xf32>
    %221 = arith.addf %216, %220 : vector<8x32xf32>
    %222 = math.tanh %221 : vector<8x32xf32>
    %cst_62 = arith.constant 1.000000e+00 : f32
    %223 = vector.broadcast %cst_62 : f32 to vector<8x32xf32>
    %224 = arith.subf %223, %215 : vector<8x32xf32>
    %225 = arith.mulf %224, %222 : vector<8x32xf32>
    %226 = arith.mulf %215, %196 : vector<8x32xf32>
    %227 = arith.addf %225, %226 : vector<8x32xf32>
    %c48_63 = arith.constant 48 : index
    %c0_64 = arith.constant 0 : index
    %228 = vector.load %arg16[%c48_63, %c0_64] : memref<64x32xf32, #tpu.memory_space<vmem>>, vector<8x32xf32>
    tpu.vector_store %arg16[%c48_63, %c0_64], %227 {strides = array<i32>} : memref<64x32xf32, #tpu.memory_space<vmem>>, vector<8x32xf32>,
    %cst_65 = arith.constant dense<0.000000e+00> : vector<8x96xf32>
    %229 = tpu.matmul %227, %8, %cst_65 {dimension_numbers = #tpu.dot_dimension_numbers<[1], [0], [0], [1], [0, 0, 1, 1], [], []>} : vector<8x32xf32>, vector<32x96xf32>, vector<8x96xf32> -> vector<8x96xf32>
    %c56 = arith.constant 56 : index
    %c0_66 = arith.constant 0 : index
    %230 = vector.load %arg15[%c56, %c0_66] : memref<64x96xf32, #tpu.memory_space<vmem>>, vector<8x96xf32>
    %231 = vector.extract_strided_slice %230 {offsets = [0, 0], sizes = [8, 32], strides = [1, 1]} : vector<8x96xf32> to vector<8x32xf32>
    %232 = vector.extract_strided_slice %229 {offsets = [0, 0], sizes = [8, 32], strides = [1, 1]} : vector<8x96xf32> to vector<8x32xf32>
    %233 = arith.addf %231, %232 : vector<8x32xf32>
    %234 = arith.negf %233 : vector<8x32xf32>
    %235 = math.exp %234 : vector<8x32xf32>
    %cst_67 = arith.constant 1.000000e+00 : f32
    %236 = vector.broadcast %cst_67 : f32 to vector<8x32xf32>
    %237 = arith.addf %236, %235 : vector<8x32xf32>
    %238 = arith.divf %236, %237 : vector<8x32xf32>
    %239 = vector.extract_strided_slice %230 {offsets = [0, 32], sizes = [8, 32], strides = [1, 1]} : vector<8x96xf32> to vector<8x32xf32>
    %240 = vector.extract_strided_slice %229 {offsets = [0, 32], sizes = [8, 32], strides = [1, 1]} : vector<8x96xf32> to vector<8x32xf32>
    %241 = arith.addf %239, %240 : vector<8x32xf32>
    %242 = arith.negf %241 : vector<8x32xf32>
    %243 = math.exp %242 : vector<8x32xf32>
    %cst_68 = arith.constant 1.000000e+00 : f32
    %244 = vector.broadcast %cst_68 : f32 to vector<8x32xf32>
    %245 = arith.addf %244, %243 : vector<8x32xf32>
    %246 = arith.divf %244, %245 : vector<8x32xf32>
    %247 = vector.extract_strided_slice %230 {offsets = [0, 64], sizes = [8, 32], strides = [1, 1]} : vector<8x96xf32> to vector<8x32xf32>
    %248 = vector.extract_strided_slice %229 {offsets = [0, 64], sizes = [8, 32], strides = [1, 1]} : vector<8x96xf32> to vector<8x32xf32>
    %249 = vector.broadcast %9 : vector<1x32xf32> to vector<8x32xf32>
    %250 = arith.addf %248, %249 : vector<8x32xf32>
    %251 = arith.mulf %238, %250 : vector<8x32xf32>
    %252 = arith.addf %247, %251 : vector<8x32xf32>
    %253 = math.tanh %252 : vector<8x32xf32>
    %cst_69 = arith.constant 1.000000e+00 : f32
    %254 = vector.broadcast %cst_69 : f32 to vector<8x32xf32>
    %255 = arith.subf %254, %246 : vector<8x32xf32>
    %256 = arith.mulf %255, %253 : vector<8x32xf32>
    %257 = arith.mulf %246, %227 : vector<8x32xf32>
    %258 = arith.addf %256, %257 : vector<8x32xf32>
    %c56_70 = arith.constant 56 : index
    %c0_71 = arith.constant 0 : index
    %259 = vector.load %arg16[%c56_70, %c0_71] : memref<64x32xf32, #tpu.memory_space<vmem>>, vector<8x32xf32>
    tpu.vector_store %arg16[%c56_70, %c0_71], %258 {strides = array<i32>} : memref<64x32xf32, #tpu.memory_space<vmem>>, vector<8x32xf32>,
    %c0_72 = arith.constant 0 : index
    %c0_73 = arith.constant 0 : index
    %c0_74 = arith.constant 0 : index
    %260 = vector.load %arg14[%c0_72, %c0_73, %c0_74] : memref<2x8x32xf32, #tpu.memory_space<vmem>>, vector<1x8x32xf32>
    %261 = vector.shape_cast %260 : vector<1x8x32xf32> to vector<8x32xf32>
    %262 = vector.shape_cast %258 : vector<8x32xf32> to vector<1x8x32xf32>
    tpu.vector_store %arg14[%c0_72, %c0_73, %c0_74], %262 {strides = array<i32>} : memref<2x8x32xf32, #tpu.memory_space<vmem>>, vector<1x8x32xf32>,
    %c0_75 = arith.constant 0 : index
    %c0_76 = arith.constant 0 : index
    %263 = vector.load %arg16[%c0_75, %c0_76] : memref<64x32xf32, #tpu.memory_space<vmem>>, vector<64x32xf32>
    %c0_77 = arith.constant 0 : index
    %c0_78 = arith.constant 0 : index
    %264 = vector.load %arg7[%c0_77, %c0_78] : memref<32x96xf32, #tpu.memory_space<vmem>>, vector<32x96xf32>
    %cst_79 = arith.constant dense<0.000000e+00> : vector<64x96xf32>
    %265 = tpu.matmul %263, %264, %cst_79 {dimension_numbers = #tpu.dot_dimension_numbers<[1], [0], [0], [1], [0, 0, 1, 1], [], []>} : vector<64x32xf32>, vector<32x96xf32>, vector<64x96xf32> -> vector<64x96xf32>
    %c0_80 = arith.constant 0 : index
    %c0_81 = arith.constant 0 : index
    %266 = vector.load %arg9[%c0_80, %c0_81] : memref<1x96xf32, #tpu.memory_space<vmem>>, vector<1x96xf32>
    %267 = vector.broadcast %266 : vector<1x96xf32> to vector<64x96xf32>
    %268 = arith.addf %265, %267 : vector<64x96xf32>
    %c0_82 = arith.constant 0 : index
    %c0_83 = arith.constant 0 : index
    %269 = vector.load %arg15[%c0_82, %c0_83] : memref<64x96xf32, #tpu.memory_space<vmem>>, vector<64x96xf32>
    tpu.vector_store %arg15[%c0_82, %c0_83], %268 {strides = array<i32>} : memref<64x96xf32, #tpu.memory_space<vmem>>, vector<64x96xf32>,
    %c0_84 = arith.constant 0 : index
    %c0_85 = arith.constant 0 : index
    %270 = vector.load %arg8[%c0_84, %c0_85] : memref<32x96xf32, #tpu.memory_space<vmem>>, vector<32x96xf32>
    %c0_86 = arith.constant 0 : index
    %c0_87 = arith.constant 0 : index
    %271 = vector.load %arg10[%c0_86, %c0_87] : memref<1x32xf32, #tpu.memory_space<vmem>>, vector<1x32xf32>
    %c1 = arith.constant 1 : index
    %c0_88 = arith.constant 0 : index
    %c0_89 = arith.constant 0 : index
    %272 = vector.load %arg2[%c1, %c0_88, %c0_89] : memref<2x8x32xf32, #tpu.memory_space<vmem>>, vector<1x8x32xf32>
    %273 = vector.shape_cast %272 : vector<1x8x32xf32> to vector<8x32xf32>
    %cst_90 = arith.constant dense<0.000000e+00> : vector<8x96xf32>
    %274 = tpu.matmul %273, %270, %cst_90 {dimension_numbers = #tpu.dot_dimension_numbers<[1], [0], [0], [1], [0, 0, 1, 1], [], []>} : vector<8x32xf32>, vector<32x96xf32>, vector<8x96xf32> -> vector<8x96xf32>
    %c0_91 = arith.constant 0 : index
    %c0_92 = arith.constant 0 : index
    %275 = vector.load %arg15[%c0_91, %c0_92] : memref<64x96xf32, #tpu.memory_space<vmem>>, vector<8x96xf32>
    %276 = vector.extract_strided_slice %275 {offsets = [0, 0], sizes = [8, 32], strides = [1, 1]} : vector<8x96xf32> to vector<8x32xf32>
    %277 = vector.extract_strided_slice %274 {offsets = [0, 0], sizes = [8, 32], strides = [1, 1]} : vector<8x96xf32> to vector<8x32xf32>
    %278 = arith.addf %276, %277 : vector<8x32xf32>
    %279 = arith.negf %278 : vector<8x32xf32>
    %280 = math.exp %279 : vector<8x32xf32>
    %cst_93 = arith.constant 1.000000e+00 : f32
    %281 = vector.broadcast %cst_93 : f32 to vector<8x32xf32>
    %282 = arith.addf %281, %280 : vector<8x32xf32>
    %283 = arith.divf %281, %282 : vector<8x32xf32>
    %284 = vector.extract_strided_slice %275 {offsets = [0, 32], sizes = [8, 32], strides = [1, 1]} : vector<8x96xf32> to vector<8x32xf32>
    %285 = vector.extract_strided_slice %274 {offsets = [0, 32], sizes = [8, 32], strides = [1, 1]} : vector<8x96xf32> to vector<8x32xf32>
    %286 = arith.addf %284, %285 : vector<8x32xf32>
    %287 = arith.negf %286 : vector<8x32xf32>
    %288 = math.exp %287 : vector<8x32xf32>
    %cst_94 = arith.constant 1.000000e+00 : f32
    %289 = vector.broadcast %cst_94 : f32 to vector<8x32xf32>
    %290 = arith.addf %289, %288 : vector<8x32xf32>
    %291 = arith.divf %289, %290 : vector<8x32xf32>
    %292 = vector.extract_strided_slice %275 {offsets = [0, 64], sizes = [8, 32], strides = [1, 1]} : vector<8x96xf32> to vector<8x32xf32>
    %293 = vector.extract_strided_slice %274 {offsets = [0, 64], sizes = [8, 32], strides = [1, 1]} : vector<8x96xf32> to vector<8x32xf32>
    %294 = vector.broadcast %271 : vector<1x32xf32> to vector<8x32xf32>
    %295 = arith.addf %293, %294 : vector<8x32xf32>
    %296 = arith.mulf %283, %295 : vector<8x32xf32>
    %297 = arith.addf %292, %296 : vector<8x32xf32>
    %298 = math.tanh %297 : vector<8x32xf32>
    %cst_95 = arith.constant 1.000000e+00 : f32
    %299 = vector.broadcast %cst_95 : f32 to vector<8x32xf32>
    %300 = arith.subf %299, %291 : vector<8x32xf32>
    %301 = arith.mulf %300, %298 : vector<8x32xf32>
    %302 = arith.mulf %291, %273 : vector<8x32xf32>
    %303 = arith.addf %301, %302 : vector<8x32xf32>
    %c0_96 = arith.constant 0 : index
    %c0_97 = arith.constant 0 : index
    %304 = vector.load %arg16[%c0_96, %c0_97] : memref<64x32xf32, #tpu.memory_space<vmem>>, vector<8x32xf32>
    tpu.vector_store %arg16[%c0_96, %c0_97], %303 {strides = array<i32>} : memref<64x32xf32, #tpu.memory_space<vmem>>, vector<8x32xf32>,
    %cst_98 = arith.constant dense<0.000000e+00> : vector<8x96xf32>
    %305 = tpu.matmul %303, %270, %cst_98 {dimension_numbers = #tpu.dot_dimension_numbers<[1], [0], [0], [1], [0, 0, 1, 1], [], []>} : vector<8x32xf32>, vector<32x96xf32>, vector<8x96xf32> -> vector<8x96xf32>
    %c8_99 = arith.constant 8 : index
    %c0_100 = arith.constant 0 : index
    %306 = vector.load %arg15[%c8_99, %c0_100] : memref<64x96xf32, #tpu.memory_space<vmem>>, vector<8x96xf32>
    %307 = vector.extract_strided_slice %306 {offsets = [0, 0], sizes = [8, 32], strides = [1, 1]} : vector<8x96xf32> to vector<8x32xf32>
    %308 = vector.extract_strided_slice %305 {offsets = [0, 0], sizes = [8, 32], strides = [1, 1]} : vector<8x96xf32> to vector<8x32xf32>
    %309 = arith.addf %307, %308 : vector<8x32xf32>
    %310 = arith.negf %309 : vector<8x32xf32>
    %311 = math.exp %310 : vector<8x32xf32>
    %cst_101 = arith.constant 1.000000e+00 : f32
    %312 = vector.broadcast %cst_101 : f32 to vector<8x32xf32>
    %313 = arith.addf %312, %311 : vector<8x32xf32>
    %314 = arith.divf %312, %313 : vector<8x32xf32>
    %315 = vector.extract_strided_slice %306 {offsets = [0, 32], sizes = [8, 32], strides = [1, 1]} : vector<8x96xf32> to vector<8x32xf32>
    %316 = vector.extract_strided_slice %305 {offsets = [0, 32], sizes = [8, 32], strides = [1, 1]} : vector<8x96xf32> to vector<8x32xf32>
    %317 = arith.addf %315, %316 : vector<8x32xf32>
    %318 = arith.negf %317 : vector<8x32xf32>
    %319 = math.exp %318 : vector<8x32xf32>
    %cst_102 = arith.constant 1.000000e+00 : f32
    %320 = vector.broadcast %cst_102 : f32 to vector<8x32xf32>
    %321 = arith.addf %320, %319 : vector<8x32xf32>
    %322 = arith.divf %320, %321 : vector<8x32xf32>
    %323 = vector.extract_strided_slice %306 {offsets = [0, 64], sizes = [8, 32], strides = [1, 1]} : vector<8x96xf32> to vector<8x32xf32>
    %324 = vector.extract_strided_slice %305 {offsets = [0, 64], sizes = [8, 32], strides = [1, 1]} : vector<8x96xf32> to vector<8x32xf32>
    %325 = vector.broadcast %271 : vector<1x32xf32> to vector<8x32xf32>
    %326 = arith.addf %324, %325 : vector<8x32xf32>
    %327 = arith.mulf %314, %326 : vector<8x32xf32>
    %328 = arith.addf %323, %327 : vector<8x32xf32>
    %329 = math.tanh %328 : vector<8x32xf32>
    %cst_103 = arith.constant 1.000000e+00 : f32
    %330 = vector.broadcast %cst_103 : f32 to vector<8x32xf32>
    %331 = arith.subf %330, %322 : vector<8x32xf32>
    %332 = arith.mulf %331, %329 : vector<8x32xf32>
    %333 = arith.mulf %322, %303 : vector<8x32xf32>
    %334 = arith.addf %332, %333 : vector<8x32xf32>
    %c8_104 = arith.constant 8 : index
    %c0_105 = arith.constant 0 : index
    %335 = vector.load %arg16[%c8_104, %c0_105] : memref<64x32xf32, #tpu.memory_space<vmem>>, vector<8x32xf32>
    tpu.vector_store %arg16[%c8_104, %c0_105], %334 {strides = array<i32>} : memref<64x32xf32, #tpu.memory_space<vmem>>, vector<8x32xf32>,
    %cst_106 = arith.constant dense<0.000000e+00> : vector<8x96xf32>
    %336 = tpu.matmul %334, %270, %cst_106 {dimension_numbers = #tpu.dot_dimension_numbers<[1], [0], [0], [1], [0, 0, 1, 1], [], []>} : vector<8x32xf32>, vector<32x96xf32>, vector<8x96xf32> -> vector<8x96xf32>
    %c16_107 = arith.constant 16 : index
    %c0_108 = arith.constant 0 : index
    %337 = vector.load %arg15[%c16_107, %c0_108] : memref<64x96xf32, #tpu.memory_space<vmem>>, vector<8x96xf32>
    %338 = vector.extract_strided_slice %337 {offsets = [0, 0], sizes = [8, 32], strides = [1, 1]} : vector<8x96xf32> to vector<8x32xf32>
    %339 = vector.extract_strided_slice %336 {offsets = [0, 0], sizes = [8, 32], strides = [1, 1]} : vector<8x96xf32> to vector<8x32xf32>
    %340 = arith.addf %338, %339 : vector<8x32xf32>
    %341 = arith.negf %340 : vector<8x32xf32>
    %342 = math.exp %341 : vector<8x32xf32>
    %cst_109 = arith.constant 1.000000e+00 : f32
    %343 = vector.broadcast %cst_109 : f32 to vector<8x32xf32>
    %344 = arith.addf %343, %342 : vector<8x32xf32>
    %345 = arith.divf %343, %344 : vector<8x32xf32>
    %346 = vector.extract_strided_slice %337 {offsets = [0, 32], sizes = [8, 32], strides = [1, 1]} : vector<8x96xf32> to vector<8x32xf32>
    %347 = vector.extract_strided_slice %336 {offsets = [0, 32], sizes = [8, 32], strides = [1, 1]} : vector<8x96xf32> to vector<8x32xf32>
    %348 = arith.addf %346, %347 : vector<8x32xf32>
    %349 = arith.negf %348 : vector<8x32xf32>
    %350 = math.exp %349 : vector<8x32xf32>
    %cst_110 = arith.constant 1.000000e+00 : f32
    %351 = vector.broadcast %cst_110 : f32 to vector<8x32xf32>
    %352 = arith.addf %351, %350 : vector<8x32xf32>
    %353 = arith.divf %351, %352 : vector<8x32xf32>
    %354 = vector.extract_strided_slice %337 {offsets = [0, 64], sizes = [8, 32], strides = [1, 1]} : vector<8x96xf32> to vector<8x32xf32>
    %355 = vector.extract_strided_slice %336 {offsets = [0, 64], sizes = [8, 32], strides = [1, 1]} : vector<8x96xf32> to vector<8x32xf32>
    %356 = vector.broadcast %271 : vector<1x32xf32> to vector<8x32xf32>
    %357 = arith.addf %355, %356 : vector<8x32xf32>
    %358 = arith.mulf %345, %357 : vector<8x32xf32>
    %359 = arith.addf %354, %358 : vector<8x32xf32>
    %360 = math.tanh %359 : vector<8x32xf32>
    %cst_111 = arith.constant 1.000000e+00 : f32
    %361 = vector.broadcast %cst_111 : f32 to vector<8x32xf32>
    %362 = arith.subf %361, %353 : vector<8x32xf32>
    %363 = arith.mulf %362, %360 : vector<8x32xf32>
    %364 = arith.mulf %353, %334 : vector<8x32xf32>
    %365 = arith.addf %363, %364 : vector<8x32xf32>
    %c16_112 = arith.constant 16 : index
    %c0_113 = arith.constant 0 : index
    %366 = vector.load %arg16[%c16_112, %c0_113] : memref<64x32xf32, #tpu.memory_space<vmem>>, vector<8x32xf32>
    tpu.vector_store %arg16[%c16_112, %c0_113], %365 {strides = array<i32>} : memref<64x32xf32, #tpu.memory_space<vmem>>, vector<8x32xf32>,
    %cst_114 = arith.constant dense<0.000000e+00> : vector<8x96xf32>
    %367 = tpu.matmul %365, %270, %cst_114 {dimension_numbers = #tpu.dot_dimension_numbers<[1], [0], [0], [1], [0, 0, 1, 1], [], []>} : vector<8x32xf32>, vector<32x96xf32>, vector<8x96xf32> -> vector<8x96xf32>
    %c24_115 = arith.constant 24 : index
    %c0_116 = arith.constant 0 : index
    %368 = vector.load %arg15[%c24_115, %c0_116] : memref<64x96xf32, #tpu.memory_space<vmem>>, vector<8x96xf32>
    %369 = vector.extract_strided_slice %368 {offsets = [0, 0], sizes = [8, 32], strides = [1, 1]} : vector<8x96xf32> to vector<8x32xf32>
    %370 = vector.extract_strided_slice %367 {offsets = [0, 0], sizes = [8, 32], strides = [1, 1]} : vector<8x96xf32> to vector<8x32xf32>
    %371 = arith.addf %369, %370 : vector<8x32xf32>
    %372 = arith.negf %371 : vector<8x32xf32>
    %373 = math.exp %372 : vector<8x32xf32>
    %cst_117 = arith.constant 1.000000e+00 : f32
    %374 = vector.broadcast %cst_117 : f32 to vector<8x32xf32>
    %375 = arith.addf %374, %373 : vector<8x32xf32>
    %376 = arith.divf %374, %375 : vector<8x32xf32>
    %377 = vector.extract_strided_slice %368 {offsets = [0, 32], sizes = [8, 32], strides = [1, 1]} : vector<8x96xf32> to vector<8x32xf32>
    %378 = vector.extract_strided_slice %367 {offsets = [0, 32], sizes = [8, 32], strides = [1, 1]} : vector<8x96xf32> to vector<8x32xf32>
    %379 = arith.addf %377, %378 : vector<8x32xf32>
    %380 = arith.negf %379 : vector<8x32xf32>
    %381 = math.exp %380 : vector<8x32xf32>
    %cst_118 = arith.constant 1.000000e+00 : f32
    %382 = vector.broadcast %cst_118 : f32 to vector<8x32xf32>
    %383 = arith.addf %382, %381 : vector<8x32xf32>
    %384 = arith.divf %382, %383 : vector<8x32xf32>
    %385 = vector.extract_strided_slice %368 {offsets = [0, 64], sizes = [8, 32], strides = [1, 1]} : vector<8x96xf32> to vector<8x32xf32>
    %386 = vector.extract_strided_slice %367 {offsets = [0, 64], sizes = [8, 32], strides = [1, 1]} : vector<8x96xf32> to vector<8x32xf32>
    %387 = vector.broadcast %271 : vector<1x32xf32> to vector<8x32xf32>
    %388 = arith.addf %386, %387 : vector<8x32xf32>
    %389 = arith.mulf %376, %388 : vector<8x32xf32>
    %390 = arith.addf %385, %389 : vector<8x32xf32>
    %391 = math.tanh %390 : vector<8x32xf32>
    %cst_119 = arith.constant 1.000000e+00 : f32
    %392 = vector.broadcast %cst_119 : f32 to vector<8x32xf32>
    %393 = arith.subf %392, %384 : vector<8x32xf32>
    %394 = arith.mulf %393, %391 : vector<8x32xf32>
    %395 = arith.mulf %384, %365 : vector<8x32xf32>
    %396 = arith.addf %394, %395 : vector<8x32xf32>
    %c24_120 = arith.constant 24 : index
    %c0_121 = arith.constant 0 : index
    %397 = vector.load %arg16[%c24_120, %c0_121] : memref<64x32xf32, #tpu.memory_space<vmem>>, vector<8x32xf32>
    tpu.vector_store %arg16[%c24_120, %c0_121], %396 {strides = array<i32>} : memref<64x32xf32, #tpu.memory_space<vmem>>, vector<8x32xf32>,
    %cst_122 = arith.constant dense<0.000000e+00> : vector<8x96xf32>
    %398 = tpu.matmul %396, %270, %cst_122 {dimension_numbers = #tpu.dot_dimension_numbers<[1], [0], [0], [1], [0, 0, 1, 1], [], []>} : vector<8x32xf32>, vector<32x96xf32>, vector<8x96xf32> -> vector<8x96xf32>
    %c32_123 = arith.constant 32 : index
    %c0_124 = arith.constant 0 : index
    %399 = vector.load %arg15[%c32_123, %c0_124] : memref<64x96xf32, #tpu.memory_space<vmem>>, vector<8x96xf32>
    %400 = vector.extract_strided_slice %399 {offsets = [0, 0], sizes = [8, 32], strides = [1, 1]} : vector<8x96xf32> to vector<8x32xf32>
    %401 = vector.extract_strided_slice %398 {offsets = [0, 0], sizes = [8, 32], strides = [1, 1]} : vector<8x96xf32> to vector<8x32xf32>
    %402 = arith.addf %400, %401 : vector<8x32xf32>
    %403 = arith.negf %402 : vector<8x32xf32>
    %404 = math.exp %403 : vector<8x32xf32>
    %cst_125 = arith.constant 1.000000e+00 : f32
    %405 = vector.broadcast %cst_125 : f32 to vector<8x32xf32>
    %406 = arith.addf %405, %404 : vector<8x32xf32>
    %407 = arith.divf %405, %406 : vector<8x32xf32>
    %408 = vector.extract_strided_slice %399 {offsets = [0, 32], sizes = [8, 32], strides = [1, 1]} : vector<8x96xf32> to vector<8x32xf32>
    %409 = vector.extract_strided_slice %398 {offsets = [0, 32], sizes = [8, 32], strides = [1, 1]} : vector<8x96xf32> to vector<8x32xf32>
    %410 = arith.addf %408, %409 : vector<8x32xf32>
    %411 = arith.negf %410 : vector<8x32xf32>
    %412 = math.exp %411 : vector<8x32xf32>
    %cst_126 = arith.constant 1.000000e+00 : f32
    %413 = vector.broadcast %cst_126 : f32 to vector<8x32xf32>
    %414 = arith.addf %413, %412 : vector<8x32xf32>
    %415 = arith.divf %413, %414 : vector<8x32xf32>
    %416 = vector.extract_strided_slice %399 {offsets = [0, 64], sizes = [8, 32], strides = [1, 1]} : vector<8x96xf32> to vector<8x32xf32>
    %417 = vector.extract_strided_slice %398 {offsets = [0, 64], sizes = [8, 32], strides = [1, 1]} : vector<8x96xf32> to vector<8x32xf32>
    %418 = vector.broadcast %271 : vector<1x32xf32> to vector<8x32xf32>
    %419 = arith.addf %417, %418 : vector<8x32xf32>
    %420 = arith.mulf %407, %419 : vector<8x32xf32>
    %421 = arith.addf %416, %420 : vector<8x32xf32>
    %422 = math.tanh %421 : vector<8x32xf32>
    %cst_127 = arith.constant 1.000000e+00 : f32
    %423 = vector.broadcast %cst_127 : f32 to vector<8x32xf32>
    %424 = arith.subf %423, %415 : vector<8x32xf32>
    %425 = arith.mulf %424, %422 : vector<8x32xf32>
    %426 = arith.mulf %415, %396 : vector<8x32xf32>
    %427 = arith.addf %425, %426 : vector<8x32xf32>
    %c32_128 = arith.constant 32 : index
    %c0_129 = arith.constant 0 : index
    %428 = vector.load %arg16[%c32_128, %c0_129] : memref<64x32xf32, #tpu.memory_space<vmem>>, vector<8x32xf32>
    tpu.vector_store %arg16[%c32_128, %c0_129], %427 {strides = array<i32>} : memref<64x32xf32, #tpu.memory_space<vmem>>, vector<8x32xf32>,
    %cst_130 = arith.constant dense<0.000000e+00> : vector<8x96xf32>
    %429 = tpu.matmul %427, %270, %cst_130 {dimension_numbers = #tpu.dot_dimension_numbers<[1], [0], [0], [1], [0, 0, 1, 1], [], []>} : vector<8x32xf32>, vector<32x96xf32>, vector<8x96xf32> -> vector<8x96xf32>
    %c40_131 = arith.constant 40 : index
    %c0_132 = arith.constant 0 : index
    %430 = vector.load %arg15[%c40_131, %c0_132] : memref<64x96xf32, #tpu.memory_space<vmem>>, vector<8x96xf32>
    %431 = vector.extract_strided_slice %430 {offsets = [0, 0], sizes = [8, 32], strides = [1, 1]} : vector<8x96xf32> to vector<8x32xf32>
    %432 = vector.extract_strided_slice %429 {offsets = [0, 0], sizes = [8, 32], strides = [1, 1]} : vector<8x96xf32> to vector<8x32xf32>
    %433 = arith.addf %431, %432 : vector<8x32xf32>
    %434 = arith.negf %433 : vector<8x32xf32>
    %435 = math.exp %434 : vector<8x32xf32>
    %cst_133 = arith.constant 1.000000e+00 : f32
    %436 = vector.broadcast %cst_133 : f32 to vector<8x32xf32>
    %437 = arith.addf %436, %435 : vector<8x32xf32>
    %438 = arith.divf %436, %437 : vector<8x32xf32>
    %439 = vector.extract_strided_slice %430 {offsets = [0, 32], sizes = [8, 32], strides = [1, 1]} : vector<8x96xf32> to vector<8x32xf32>
    %440 = vector.extract_strided_slice %429 {offsets = [0, 32], sizes = [8, 32], strides = [1, 1]} : vector<8x96xf32> to vector<8x32xf32>
    %441 = arith.addf %439, %440 : vector<8x32xf32>
    %442 = arith.negf %441 : vector<8x32xf32>
    %443 = math.exp %442 : vector<8x32xf32>
    %cst_134 = arith.constant 1.000000e+00 : f32
    %444 = vector.broadcast %cst_134 : f32 to vector<8x32xf32>
    %445 = arith.addf %444, %443 : vector<8x32xf32>
    %446 = arith.divf %444, %445 : vector<8x32xf32>
    %447 = vector.extract_strided_slice %430 {offsets = [0, 64], sizes = [8, 32], strides = [1, 1]} : vector<8x96xf32> to vector<8x32xf32>
    %448 = vector.extract_strided_slice %429 {offsets = [0, 64], sizes = [8, 32], strides = [1, 1]} : vector<8x96xf32> to vector<8x32xf32>
    %449 = vector.broadcast %271 : vector<1x32xf32> to vector<8x32xf32>
    %450 = arith.addf %448, %449 : vector<8x32xf32>
    %451 = arith.mulf %438, %450 : vector<8x32xf32>
    %452 = arith.addf %447, %451 : vector<8x32xf32>
    %453 = math.tanh %452 : vector<8x32xf32>
    %cst_135 = arith.constant 1.000000e+00 : f32
    %454 = vector.broadcast %cst_135 : f32 to vector<8x32xf32>
    %455 = arith.subf %454, %446 : vector<8x32xf32>
    %456 = arith.mulf %455, %453 : vector<8x32xf32>
    %457 = arith.mulf %446, %427 : vector<8x32xf32>
    %458 = arith.addf %456, %457 : vector<8x32xf32>
    %c40_136 = arith.constant 40 : index
    %c0_137 = arith.constant 0 : index
    %459 = vector.load %arg16[%c40_136, %c0_137] : memref<64x32xf32, #tpu.memory_space<vmem>>, vector<8x32xf32>
    tpu.vector_store %arg16[%c40_136, %c0_137], %458 {strides = array<i32>} : memref<64x32xf32, #tpu.memory_space<vmem>>, vector<8x32xf32>,
    %cst_138 = arith.constant dense<0.000000e+00> : vector<8x96xf32>
    %460 = tpu.matmul %458, %270, %cst_138 {dimension_numbers = #tpu.dot_dimension_numbers<[1], [0], [0], [1], [0, 0, 1, 1], [], []>} : vector<8x32xf32>, vector<32x96xf32>, vector<8x96xf32> -> vector<8x96xf32>
    %c48_139 = arith.constant 48 : index
    %c0_140 = arith.constant 0 : index
    %461 = vector.load %arg15[%c48_139, %c0_140] : memref<64x96xf32, #tpu.memory_space<vmem>>, vector<8x96xf32>
    %462 = vector.extract_strided_slice %461 {offsets = [0, 0], sizes = [8, 32], strides = [1, 1]} : vector<8x96xf32> to vector<8x32xf32>
    %463 = vector.extract_strided_slice %460 {offsets = [0, 0], sizes = [8, 32], strides = [1, 1]} : vector<8x96xf32> to vector<8x32xf32>
    %464 = arith.addf %462, %463 : vector<8x32xf32>
    %465 = arith.negf %464 : vector<8x32xf32>
    %466 = math.exp %465 : vector<8x32xf32>
    %cst_141 = arith.constant 1.000000e+00 : f32
    %467 = vector.broadcast %cst_141 : f32 to vector<8x32xf32>
    %468 = arith.addf %467, %466 : vector<8x32xf32>
    %469 = arith.divf %467, %468 : vector<8x32xf32>
    %470 = vector.extract_strided_slice %461 {offsets = [0, 32], sizes = [8, 32], strides = [1, 1]} : vector<8x96xf32> to vector<8x32xf32>
    %471 = vector.extract_strided_slice %460 {offsets = [0, 32], sizes = [8, 32], strides = [1, 1]} : vector<8x96xf32> to vector<8x32xf32>
    %472 = arith.addf %470, %471 : vector<8x32xf32>
    %473 = arith.negf %472 : vector<8x32xf32>
    %474 = math.exp %473 : vector<8x32xf32>
    %cst_142 = arith.constant 1.000000e+00 : f32
    %475 = vector.broadcast %cst_142 : f32 to vector<8x32xf32>
    %476 = arith.addf %475, %474 : vector<8x32xf32>
    %477 = arith.divf %475, %476 : vector<8x32xf32>
    %478 = vector.extract_strided_slice %461 {offsets = [0, 64], sizes = [8, 32], strides = [1, 1]} : vector<8x96xf32> to vector<8x32xf32>
    %479 = vector.extract_strided_slice %460 {offsets = [0, 64], sizes = [8, 32], strides = [1, 1]} : vector<8x96xf32> to vector<8x32xf32>
    %480 = vector.broadcast %271 : vector<1x32xf32> to vector<8x32xf32>
    %481 = arith.addf %479, %480 : vector<8x32xf32>
    %482 = arith.mulf %469, %481 : vector<8x32xf32>
    %483 = arith.addf %478, %482 : vector<8x32xf32>
    %484 = math.tanh %483 : vector<8x32xf32>
    %cst_143 = arith.constant 1.000000e+00 : f32
    %485 = vector.broadcast %cst_143 : f32 to vector<8x32xf32>
    %486 = arith.subf %485, %477 : vector<8x32xf32>
    %487 = arith.mulf %486, %484 : vector<8x32xf32>
    %488 = arith.mulf %477, %458 : vector<8x32xf32>
    %489 = arith.addf %487, %488 : vector<8x32xf32>
    %c48_144 = arith.constant 48 : index
    %c0_145 = arith.constant 0 : index
    %490 = vector.load %arg16[%c48_144, %c0_145] : memref<64x32xf32, #tpu.memory_space<vmem>>, vector<8x32xf32>
    tpu.vector_store %arg16[%c48_144, %c0_145], %489 {strides = array<i32>} : memref<64x32xf32, #tpu.memory_space<vmem>>, vector<8x32xf32>,
    %cst_146 = arith.constant dense<0.000000e+00> : vector<8x96xf32>
    %491 = tpu.matmul %489, %270, %cst_146 {dimension_numbers = #tpu.dot_dimension_numbers<[1], [0], [0], [1], [0, 0, 1, 1], [], []>} : vector<8x32xf32>, vector<32x96xf32>, vector<8x96xf32> -> vector<8x96xf32>
    %c56_147 = arith.constant 56 : index
    %c0_148 = arith.constant 0 : index
    %492 = vector.load %arg15[%c56_147, %c0_148] : memref<64x96xf32, #tpu.memory_space<vmem>>, vector<8x96xf32>
    %493 = vector.extract_strided_slice %492 {offsets = [0, 0], sizes = [8, 32], strides = [1, 1]} : vector<8x96xf32> to vector<8x32xf32>
    %494 = vector.extract_strided_slice %491 {offsets = [0, 0], sizes = [8, 32], strides = [1, 1]} : vector<8x96xf32> to vector<8x32xf32>
    %495 = arith.addf %493, %494 : vector<8x32xf32>
    %496 = arith.negf %495 : vector<8x32xf32>
    %497 = math.exp %496 : vector<8x32xf32>
    %cst_149 = arith.constant 1.000000e+00 : f32
    %498 = vector.broadcast %cst_149 : f32 to vector<8x32xf32>
    %499 = arith.addf %498, %497 : vector<8x32xf32>
    %500 = arith.divf %498, %499 : vector<8x32xf32>
    %501 = vector.extract_strided_slice %492 {offsets = [0, 32], sizes = [8, 32], strides = [1, 1]} : vector<8x96xf32> to vector<8x32xf32>
    %502 = vector.extract_strided_slice %491 {offsets = [0, 32], sizes = [8, 32], strides = [1, 1]} : vector<8x96xf32> to vector<8x32xf32>
    %503 = arith.addf %501, %502 : vector<8x32xf32>
    %504 = arith.negf %503 : vector<8x32xf32>
    %505 = math.exp %504 : vector<8x32xf32>
    %cst_150 = arith.constant 1.000000e+00 : f32
    %506 = vector.broadcast %cst_150 : f32 to vector<8x32xf32>
    %507 = arith.addf %506, %505 : vector<8x32xf32>
    %508 = arith.divf %506, %507 : vector<8x32xf32>
    %509 = vector.extract_strided_slice %492 {offsets = [0, 64], sizes = [8, 32], strides = [1, 1]} : vector<8x96xf32> to vector<8x32xf32>
    %510 = vector.extract_strided_slice %491 {offsets = [0, 64], sizes = [8, 32], strides = [1, 1]} : vector<8x96xf32> to vector<8x32xf32>
    %511 = vector.broadcast %271 : vector<1x32xf32> to vector<8x32xf32>
    %512 = arith.addf %510, %511 : vector<8x32xf32>
    %513 = arith.mulf %500, %512 : vector<8x32xf32>
    %514 = arith.addf %509, %513 : vector<8x32xf32>
    %515 = math.tanh %514 : vector<8x32xf32>
    %cst_151 = arith.constant 1.000000e+00 : f32
    %516 = vector.broadcast %cst_151 : f32 to vector<8x32xf32>
    %517 = arith.subf %516, %508 : vector<8x32xf32>
    %518 = arith.mulf %517, %515 : vector<8x32xf32>
    %519 = arith.mulf %508, %489 : vector<8x32xf32>
    %520 = arith.addf %518, %519 : vector<8x32xf32>
    %c56_152 = arith.constant 56 : index
    %c0_153 = arith.constant 0 : index
    %521 = vector.load %arg16[%c56_152, %c0_153] : memref<64x32xf32, #tpu.memory_space<vmem>>, vector<8x32xf32>
    tpu.vector_store %arg16[%c56_152, %c0_153], %520 {strides = array<i32>} : memref<64x32xf32, #tpu.memory_space<vmem>>, vector<8x32xf32>,
    %c1_154 = arith.constant 1 : index
    %c0_155 = arith.constant 0 : index
    %c0_156 = arith.constant 0 : index
    %522 = vector.load %arg14[%c1_154, %c0_155, %c0_156] : memref<2x8x32xf32, #tpu.memory_space<vmem>>, vector<1x8x32xf32>
    %523 = vector.shape_cast %522 : vector<1x8x32xf32> to vector<8x32xf32>
    %524 = vector.shape_cast %520 : vector<8x32xf32> to vector<1x8x32xf32>
    tpu.vector_store %arg14[%c1_154, %c0_155, %c0_156], %524 {strides = array<i32>} : memref<2x8x32xf32, #tpu.memory_space<vmem>>, vector<1x8x32xf32>,
    %c0_157 = arith.constant 0 : index
    %c0_158 = arith.constant 0 : index
    %525 = vector.load %arg16[%c0_157, %c0_158] : memref<64x32xf32, #tpu.memory_space<vmem>>, vector<64x32xf32>
    %c0_159 = arith.constant 0 : index
    %c0_160 = arith.constant 0 : index
    %526 = vector.load %arg11[%c0_159, %c0_160] : memref<32x128xf32, #tpu.memory_space<vmem>>, vector<32x128xf32>
    %cst_161 = arith.constant dense<0.000000e+00> : vector<64x128xf32>
    %527 = tpu.matmul %525, %526, %cst_161 {dimension_numbers = #tpu.dot_dimension_numbers<[1], [0], [0], [1], [0, 0, 1, 1], [], []>} : vector<64x32xf32>, vector<32x128xf32>, vector<64x128xf32> -> vector<64x128xf32>
    %c0_162 = arith.constant 0 : index
    %c0_163 = arith.constant 0 : index
    %528 = vector.load %arg12[%c0_162, %c0_163] : memref<1x128xf32, #tpu.memory_space<vmem>>, vector<1x128xf32>
    %529 = vector.broadcast %528 : vector<1x128xf32> to vector<64x128xf32>
    %530 = arith.addf %527, %529 : vector<64x128xf32>
    %c0_164 = arith.constant 0 : index
    %c0_165 = arith.constant 0 : index
    %c0_166 = arith.constant 0 : index
    %531 = vector.load %arg13[%c0_164, %c0_165, %c0_166] : memref<1x64x128xf32, #tpu.memory_space<vmem>>, vector<1x64x128xf32>
    %532 = vector.shape_cast %531 : vector<1x64x128xf32> to vector<64x128xf32>
    %533 = vector.shape_cast %530 : vector<64x128xf32> to vector<1x64x128xf32>
    tpu.vector_store %arg13[%c0_164, %c0_165, %c0_166], %533 {strides = array<i32>} : memref<1x64x128xf32, #tpu.memory_space<vmem>>, vector<1x64x128xf32>,
    return
  }
  func.func @transform_0(%arg0: i32) -> (i32, i32, i32) {
    %c0_i32 = arith.constant 0 : i32
    %c0_i32_0 = arith.constant 0 : i32
    %c0_i32_1 = arith.constant 0 : i32
    return %arg0, %c0_i32, %c0_i32_0 : i32, i32, i32
  }
  func.func @transform_1(%arg0: i32) -> (i32, i32, i32) {
    %c0_i32 = arith.constant 0 : i32
    %c0_i32_0 = arith.constant 0 : i32
    %c0_i32_1 = arith.constant 0 : i32
    return %c0_i32, %arg0, %c0_i32_0 : i32, i32, i32
  }
  func.func @transform_2(%arg0: i32) -> (i32, i32) {
    %c0_i32 = arith.constant 0 : i32
    %c0_i32_0 = arith.constant 0 : i32
    %c0_i32_1 = arith.constant 0 : i32
    return %c0_i32, %c0_i32_0 : i32, i32
  }
  func.func @transform_3(%arg0: i32) -> (i32, i32) {
    %c0_i32 = arith.constant 0 : i32
    %c0_i32_0 = arith.constant 0 : i32
    %c0_i32_1 = arith.constant 0 : i32
    return %c0_i32, %c0_i32_0 : i32, i32
  }
  func.func @transform_4(%arg0: i32) -> (i32, i32) {
    %c0_i32 = arith.constant 0 : i32
    %c0_i32_0 = arith.constant 0 : i32
    %c0_i32_1 = arith.constant 0 : i32
    return %c0_i32, %c0_i32_0 : i32, i32
  }
  func.func @transform_5(%arg0: i32) -> (i32, i32) {
    %c0_i32 = arith.constant 0 : i32
    %c0_i32_0 = arith.constant 0 : i32
    %c0_i32_1 = arith.constant 0 : i32
    return %c0_i32, %c0_i32_0 : i32, i32
  }
  func.func @transform_6(%arg0: i32) -> (i32, i32) {
    %c0_i32 = arith.constant 0 : i32
    %c0_i32_0 = arith.constant 0 : i32
    %c0_i32_1 = arith.constant 0 : i32
    return %c0_i32, %c0_i32_0 : i32, i32
  }
  func.func @transform_7(%arg0: i32) -> (i32, i32) {
    %c0_i32 = arith.constant 0 : i32
    %c0_i32_0 = arith.constant 0 : i32
    %c0_i32_1 = arith.constant 0 : i32
    return %c0_i32, %c0_i32_0 : i32, i32
  }
  func.func @transform_8(%arg0: i32) -> (i32, i32) {
    %c0_i32 = arith.constant 0 : i32
    %c0_i32_0 = arith.constant 0 : i32
    %c0_i32_1 = arith.constant 0 : i32
    return %c0_i32, %c0_i32_0 : i32, i32
  }
  func.func @transform_9(%arg0: i32) -> (i32, i32) {
    %c0_i32 = arith.constant 0 : i32
    %c0_i32_0 = arith.constant 0 : i32
    %c0_i32_1 = arith.constant 0 : i32
    return %c0_i32, %c0_i32_0 : i32, i32
  }
  func.func @transform_10(%arg0: i32) -> (i32, i32) {
    %c0_i32 = arith.constant 0 : i32
    %c0_i32_0 = arith.constant 0 : i32
    %c0_i32_1 = arith.constant 0 : i32
    return %c0_i32, %c0_i32_0 : i32, i32
  }
  func.func @transform_11(%arg0: i32) -> (i32, i32) {
    %c0_i32 = arith.constant 0 : i32
    %c0_i32_0 = arith.constant 0 : i32
    %c0_i32_1 = arith.constant 0 : i32
    return %c0_i32, %c0_i32_0 : i32, i32
  }
  func.func @transform_12(%arg0: i32) -> (i32, i32, i32) {
    %c0_i32 = arith.constant 0 : i32
    %c0_i32_0 = arith.constant 0 : i32
    %c0_i32_1 = arith.constant 0 : i32
    return %arg0, %c0_i32, %c0_i32_0 : i32, i32, i32
  }
  func.func @transform_13(%arg0: i32) -> (i32, i32, i32) {
    %c0_i32 = arith.constant 0 : i32
    %c0_i32_0 = arith.constant 0 : i32
    %c0_i32_1 = arith.constant 0 : i32
    return %c0_i32, %arg0, %c0_i32_0 : i32, i32, i32
  }
}

</mosaic_0001>

<bundles_post_ra>
// kernel: tpu_custom_call.1
= control target key start
LH: loop header
LB: loop body
LE: loop exit
PB: predicated region body
PF: predicated region fallthrough
CT: control target
= control target key end

     0   :  { %19 = vsyncpa [#allocation5], 0  ;;  %s2326_s0 = inlined_call_operand.vmem [shape: f32[1,64,16], index: 0, kind: input, shape index: {}]   ;;  %s2327_s1 = inlined_call_operand.vmem [shape: f32[2,8,32], index: 1, kind: input, shape index: {}]   ;;  %s2328_s2 = inlined_call_operand.hbm [shape: f32[16,96], index: 2, kind: input, shape index: {}]   ;;  %s2329_s3 = inlined_call_operand.vmem [shape: f32[32,96], index: 3, kind: input, shape index: {}]   ;;  %s2330_s4 = inlined_call_operand.vmem [shape: f32[1,96], index: 4, kind: input, shape index: {}]   ;;  %s2331_s5 = inlined_call_operand.vmem [shape: f32[1,32], index: 5, kind: input, shape index: {}]   ;;  %s2332_s6 = inlined_call_operand.vmem [shape: f32[32,96], index: 6, kind: input, shape index: {}]   ;;  %s2333_s7 = inlined_call_operand.hbm [shape: f32[32,96], index: 7, kind: input, shape index: {}]   ;;  %s2334_s8 = inlined_call_operand.vmem [shape: f32[1,96], index: 8, kind: input, shape index: {}]   ;;  %s2335_s9 = inlined_call_operand.vmem [shape: f32[1,32], index: 9, kind: input, shape index: {}]   ;;  %s2336_s10 = inlined_call_operand.hbm [shape: f32[32,128], index: 10, kind: input, shape index: {}]   ;;  %s2337_s11 = inlined_call_operand.vmem [shape: f32[1,128], index: 11, kind: input, shape index: {}]   ;;  %s2338_s12 = inlined_call_operand.hbm [shape: f32[1,64,128], index: 12, kind: output, shape index: {0}]   ;;  %s2339_s13 = inlined_call_operand.hbm [shape: f32[2,8,32], index: 13, kind: output, shape index: {1}]  }
   0x1   :  { %20 = vsyncpa [#allocation8], 0 }
   0x2   :  { %21 = vsyncpa [#allocation6], 0 }
   0x3   :  { %22 = vsyncpa [#allocation12], 0  ;;  %s52_s27 = sshll.u32 %s2333_s7, 4  ;;  %s1825_s28 = smov [#allocation7]   ;;  %s53_s27 = int_to_ptr.hbm [resolvable:$true] %s52_s27 }
   0x4   :  { %s54_s29 = sshll.u32 %s1825_s28, 4  ;;  %s31_s15 = sshll.u32 %s2328_s2, 4  ;;  %s55_s29 = int_to_ptr.vmem [resolvable:$true] %s54_s29  ;;  %s32_s15 = int_to_ptr.hbm [resolvable:$true] %s31_s15 }
   0x5   :  { %s1826_s16 = smov 128   ;;  %s1827_s17 = smov 8  }
   0x6   :  { %60 = dma.hbm_to_vmem [thread:$0]  %s53_s27, 512, %s55_s29, [#allocation8], %s1826_s16, %s1826_s16, %s1827_s17  }
   0x7   :  { %s1828_s18 = smov [#allocation4]   ;;  %s69_s7 = sshll.u32 %s2336_s10, 4  ;;  %s70_s7 = int_to_ptr.hbm [resolvable:$true] %s69_s7 }
   0x8   :  { %s33_s19 = sshll.u32 %s1828_s18, 4  ;;  %s1829_s2 = smov [#allocation9]   ;;  %s34_s19 = int_to_ptr.vmem [resolvable:$true] %s33_s19 }
   0x9   :  { %39 = dma.hbm_to_vmem [thread:$0]  %s32_s15, 256, %s34_s19, [#allocation5], %s1826_s16, %s1826_s16, %s1827_s17  }
   0xa   :  { %s71_s22 = sshll.u32 %s1829_s2, 4  ;;  %s72_s22 = int_to_ptr.vmem [resolvable:$true] %s71_s22 }
   0xb   :  { %77 = dma.hbm_to_vmem [thread:$0]  %s70_s7, 512, %s72_s22, [#allocation8], %s1826_s16, %s1826_s16, %s1827_s17  }
   0xc   :  { %1817 = dma.done.wait [#allocation5], 256  }
   0xd   :  { %1818 = vsyncadd [#allocation5], 4294967040 }
   0xe   :  { %1819 = dma.done.wait [#allocation8], 1024  }
   0xf   :  { %1820 = vsyncadd [#allocation8], 4294966272  ;;  %v101_v0 = vld [vmem:[#allocation4 + $0x8] sm:$0xff]  ;;  %v1926_v1 = vld [vmem:[%s2329_s3 + $0x18] sm:$0xff]  ;;  %vm106_vm0 = vcmask 130048   ;;  %s1830_s21 = smov 32  }
  0x10   :  { %v100_v2 = vld [vmem:[#allocation4] sm:$0xff]  ;;  %145 = vmatpush.msra.mxu0 %v101_v0  ;;  %203 = vmatpush.msra.mxu1 %v1926_v1  ;;  %v1932_v3 = vld [vmem:[%s2329_s3 + $0x10] sm:$0xff]  ;;  %v1940_v5 = vld [vmem:[%s2329_s3 + $0x8] sm:$0xff]  ;;  %vm187_vm1 = vcmask 261120   ;;  %vm172_vm2 = vcmask 785408   ;;  %s1501_s30 = sshll.u32 %s2339_s13, 4  ;;  %s1502_s30 = int_to_ptr.hbm [resolvable:$true] %s1501_s30 }
  0x11   :  { %v92_v4 = vld [vmem:[%s2326_s0] sm:$0xff]  ;;  %279 = vmatpush.msra.mxu2 %v1926_v1  ;;  %347 = vmatpush.msra.mxu3 %v1926_v1  ;;  %v93_v35 = vld [vmem:[%s2326_s0 + $0x8] sm:$0xff]  ;;  %s1488_s19 = sshll.u32 %s2338_s12, 4  ;;  %s1489_s19 = int_to_ptr.hbm [resolvable:$true] %s1488_s19 }
  0x12   :  { %v1945_v6 = vld [vmem:[%s2329_s3] sm:$0xff]  ;;  %146 = vmatpush.msra.mxu0 %v100_v2  ;;  %204 = vmatpush.msra.mxu1 %v1932_v3  ;;  %s1831_s3 = smov 64  }
  0x13   :  { %v186_v7 = vld [vmem:[%s2327_s1] sm:$0xff]  ;;  %1520 = vmatmul.msk.f32.vlgmr.msra.gmra.mxu0 %vm106_vm0, %v92_v4  ;;  %280 = vmatpush.msra.mxu2 %v1932_v3 }
  0x14   :  { %v1595_v8 = vld [vmem:[%s2331_s5] ss:$0 sm:$0xff]  ;;  %255 = vrot.lane.b32.xlu2 %v186_v7, %s1830_s21  ;;  %205 = vmatpush.msra.mxu1 %v1940_v5 }
  0x15   :  { %234 = vrot.lane.b32.xlu0 %v1595_v8, %s1831_s3  ;;  %348 = vmatpush.msra.mxu3 %v1932_v3  ;;  %v1987_v9 = vld [vmem:[%s2330_s4] ss:$0 sm:$0xff]  ;;  %s1832_s4 = smov 96  }
  0x16   :  { %206 = vmatpush.msra.mxu1 %v1945_v6  ;;  %281 = vmatpush.msra.mxu2 %v1940_v5 }
  0x17   :  { %1528 = vmatmul.msk.f32.vlgmr.msra.gmra.mxu1 %vm187_vm1, %v186_v7  ;;  %349 = vmatpush.msra.mxu3 %v1940_v5 }
  0x18   :  { %415 = vmatpush.msrb.mxu1 %v1926_v1  ;;  %282 = vmatpush.msra.mxu2 %v1945_v6 }
  0x19   :  { %350 = vmatpush.msra.mxu3 %v1945_v6 }
  0x1a   :  { %416 = vmatpush.msrb.mxu1 %v1932_v3  ;;  %483 = vmatpush.msrb.mxu2 %v1926_v1 }
  0x1b   :  { %551 = vmatpush.msrb.mxu3 %v1926_v1  ;;  %1521 = vmatmul.msk.f32.gmra.mxu0 %vm106_vm0, %v93_v35 }
  0x1c   :  { %417 = vmatpush.msrb.mxu1 %v1940_v5  ;;  %484 = vmatpush.msrb.mxu2 %v1932_v3 }
  0x1d   :  { %552 = vmatpush.msrb.mxu3 %v1932_v3 }
  0x1e   :  { %418 = vmatpush.msrb.mxu1 %v1945_v6  ;;  %485 = vmatpush.msrb.mxu2 %v1940_v5 }
  0x1f   :  { %553 = vmatpush.msrb.mxu3 %v1940_v5 }
  0x20   :  { %619 = vmatpush.msra.mxu1 %v1926_v1  ;;  %486 = vmatpush.msrb.mxu2 %v1945_v6 }
  0x21   :  { %554 = vmatpush.msrb.mxu3 %v1945_v6 }
  0x22   :  { %620 = vmatpush.msra.mxu1 %v1932_v3 }
  0x24   :  { %621 = vmatpush.msra.mxu1 %v1940_v5 }
  0x26   :  { %622 = vmatpush.msra.mxu1 %v1945_v6 }
  0x6e   :  { %v256_v36 = vpop.permute.xlu2 %255 }
  0x87   :  { %v1990_v12 = vpop.permute.xlu0 %234 }
  0x90   :  { %v148_v10 = vpop.f32.mrf.mxu0 }
  0x91   :  { %v149_v11 = vadd.f32 %v1987_v9, %v148_v10 }
  0x93   :  { %173 = vst.msk [vmem:[#allocation2] sm:$0xff] %vm172_vm2, %v149_v11 }
  0x94   :  { %v208_v13 = vpop.f32.mrf.mxu1 }
  0x95   :  { %v237_v14 = vadd.f32 %v1990_v12, %v208_v13 }
  0x97   :  { %239 = vrot.lane.b32.xlu0 %v237_v14, %s1831_s3 }
  0x98   :  { %v151_v43 = vpop.f32.mrf.mxu0 }
  0x99   :  { %v152_v44 = vadd.f32 %v1987_v9, %v151_v43 }
  0x9a   :  { %v211_v15 = vld [vmem:[#allocation2] sm:$0xff] }
  0x9b   :  { %v212_v16 = vadd.f32 %v211_v15, %v208_v13  ;;  %174 = vst.msk [vmem:[#allocation2 + $0x8] sm:$0xff] %vm172_vm2, %v152_v44 }
  0x9d   :  { %v1529_v17 = vmul.f32 -1.442695, %v212_v16 }
  0x9f   :  { %1600 = vpow2.f32 %v1529_v17 }
  0xa2   :  { %v287_v47 = vld [vmem:[#allocation2 + $0x8] sm:$0xff] }
  0xa5   :  { %v1601_v18 = vpop.eup %1600 }
  0xa6   :  { %v216_v19 = vadd.f32 1.0, %v1601_v18 }
  0xa8   :  { %1602 = vrcp.f32 %v216_v19  ;;  %v228_v25 = vand.u32 2147483648, %v216_v19  ;;  %vm222_vm4 = vweird.f32 %v216_v19  ;;  %v226_v26 = vand.u32 2147483647, %v216_v19 }
  0xaa   :  { %v229_v28 = vor.u32 1.1754944e-38, %v228_v25  ;;  %vm227_vm6 = vcmp.eq.f32.partialorder %v226_v26, 8.507059e+37 }
  0xae   :  { %v1603_v20 = vpop.eup %1602 }
  0xaf   :  { %v218_v21 = vmul.f32 %v1603_v20, %v216_v19  ;;  %vm223_vm3 = vweird.f32 %v1603_v20 }
  0xb0   :  { %vm224_vm5 = vmor %vm222_vm4, %vm223_vm3 }
  0xb1   :  { %v219_v22 = vsub.f32 1.0, %v218_v21 }
  0xb3   :  { %v220_v23 = vmul.f32 %v1603_v20, %v219_v22 }
  0xb5   :  { %v221_v24 = vadd.f32 %v1603_v20, %v220_v23 }
  0xb7   :  { %v225_v27 = vsel %vm224_vm5, %v1603_v20, %v221_v24 }
  0xb8   :  { %v230_v29 = vsel %vm227_vm6, %v229_v28, %v225_v27 }
  0xb9   :  { %v249_v37 = vsub.f32 1.0, %v230_v29  ;;  %v258_v39 = vmul.f32 %v256_v36, %v230_v29  ;;  %v95_v36 = vld [vmem:[%s2326_s0 + $0x18] sm:$0xff] }
 0x109   :  { %v240_v30 = vpop.permute.xlu0 %239 }
 0x10a   :  { %v242_v31 = vmul.f32 %v240_v30, %v230_v29 }
 0x10c   :  { %244 = vrot.lane.b32.xlu1 %v242_v31, %s1831_s3 }
 0x17e   :  { %v245_v32 = vpop.permute.xlu1 %244 }
 0x17f   :  { %v247_v33 = vadd.f32 %v245_v32, %v211_v15 }
 0x181   :  { %1604 = vtanh.f32 %v247_v33 }
 0x187   :  { %v1605_v34 = vpop.eup %1604 }
 0x188   :  { %251 = vrot.lane.b32.xlu1 %v1605_v34, %s1832_s4 }
 0x1fa   :  { %v252_v38 = vpop.permute.xlu1 %251 }
 0x1fb   :  { %v254_v40 = vmul.f32 %v252_v38, %v249_v37 }
 0x1fd   :  { %v259_v41 = vadd.f32 %v258_v39, %v254_v40 }
 0x1ff   :  { %261 = vrot.lane.b32.xlu2 %v259_v41, %s1832_s4 }
 0x259   :  { %v262_v42 = vpop.permute.xlu2 %261 }
 0x25a   :  { %264 = vst.msk [vmem:[#allocation3] sm:$0xff] %vm187_vm1, %v262_v42  ;;  %1530 = vmatmul.msk.f32.vlgmr.msra.gmra.mxu2 %vm187_vm1, %v262_v42 }
 0x25b   :  { %687 = vmatpush.msra.mxu2 %v1926_v1 }
 0x25d   :  { %688 = vmatpush.msra.mxu2 %v1932_v3  ;;  %v94_v3 = vld [vmem:[%s2326_s0 + $0x10] sm:$0xff] }
 0x25e   :  { %1522 = vmatmul.msk.f32.gmra.mxu0 %vm106_vm0, %v94_v3  ;;  %v96_v3 = vld [vmem:[%s2326_s0 + $0x20] sm:$0xff] }
 0x25f   :  { %689 = vmatpush.msra.mxu2 %v1940_v5 }
 0x261   :  { %690 = vmatpush.msra.mxu2 %v1945_v6 }
 0x266   :  { %1523 = vmatmul.msk.f32.gmra.mxu0 %vm106_vm0, %v95_v36  ;;  %v97_v36 = vld [vmem:[%s2326_s0 + $0x28] sm:$0xff] }
 0x26e   :  { %1524 = vmatmul.msk.f32.gmra.mxu0 %vm106_vm0, %v96_v3 }
 0x276   :  { %1525 = vmatmul.msk.f32.gmra.mxu0 %vm106_vm0, %v97_v36 }
 0x2db   :  { %v154_v10 = vpop.f32.mrf.mxu0 }
 0x2dc   :  { %v155_v11 = vadd.f32 %v1987_v9, %v154_v10 }
 0x2dd   :  { %v284_v45 = vpop.f32.mrf.mxu2 }
 0x2de   :  { %v308_v46 = vadd.f32 %v284_v45, %v1990_v12  ;;  %v288_v48 = vadd.f32 %v287_v47, %v284_v45  ;;  %175 = vst.msk [vmem:[#allocation2 + $0x10] sm:$0xff] %vm172_vm2, %v155_v11 }
 0x2e0   :  { %310 = vrot.lane.b32.xlu0 %v308_v46, %s1831_s3  ;;  %v1531_v49 = vmul.f32 -1.442695, %v288_v48 }
 0x2e2   :  { %1606 = vpow2.f32 %v1531_v49 }
 0x2e3   :  { %v157_v42 = vpop.f32.mrf.mxu0 }
 0x2e4   :  { %v158_v43 = vadd.f32 %v1987_v9, %v157_v42  ;;  %v753_v42 = vld [vmem:[%s2332_s6 + $0x18] sm:$0xff] }
 0x2e5   :  { %v355_v16 = vld [vmem:[#allocation2 + $0x10] sm:$0xff] }
 0x2e6   :  { %176 = vst.msk [vmem:[#allocation2 + $0x18] sm:$0xff] %vm172_vm2, %v158_v43  ;;  %v752_v43 = vld [vmem:[%s2332_s6 + $0x10] sm:$0xff] }
 0x2e8   :  { %v1607_v50 = vpop.eup %1606 }
 0x2e9   :  { %v292_v51 = vadd.f32 1.0, %v1607_v50 }
 0x2eb   :  { %1608 = vrcp.f32 %v292_v51  ;;  %v304_v57 = vand.u32 2147483648, %v292_v51  ;;  %vm298_vm8 = vweird.f32 %v292_v51  ;;  %v302_v58 = vand.u32 2147483647, %v292_v51  ;;  %v160_v11 = vpop.f32.mrf.mxu0 }
 0x2ed   :  { %v305_v60 = vor.u32 1.1754944e-38, %v304_v57  ;;  %vm303_vm10 = vcmp.eq.f32.partialorder %v302_v58, 8.507059e+37 }
 0x2f1   :  { %v1609_v52 = vpop.eup %1608 }
 0x2f2   :  { %v294_v53 = vmul.f32 %v1609_v52, %v292_v51  ;;  %vm299_vm7 = vweird.f32 %v1609_v52 }
 0x2f3   :  { %vm300_vm9 = vmor %vm298_vm8, %vm299_vm7 }
 0x2f4   :  { %v295_v54 = vsub.f32 1.0, %v294_v53 }
 0x2f6   :  { %v296_v55 = vmul.f32 %v1609_v52, %v295_v54 }
 0x2f8   :  { %v297_v56 = vadd.f32 %v1609_v52, %v296_v55 }
 0x2fa   :  { %v301_v59 = vsel %vm300_vm9, %v1609_v52, %v297_v56 }
 0x2fb   :  { %v306_v62 = vsel %vm303_vm10, %v305_v60, %v301_v59 }
 0x2fc   :  { %v320_v4 = vsub.f32 1.0, %v306_v62  ;;  %v326_v6 = vmul.f32 %v306_v62, %v259_v41 }
 0x352   :  { %v311_v61 = vpop.permute.xlu0 %310 }
 0x353   :  { %v313_v63 = vmul.f32 %v311_v61, %v306_v62 }
 0x355   :  { %315 = vrot.lane.b32.xlu1 %v313_v63, %s1831_s3 }
 0x3c7   :  { %v316_v0 = vpop.permute.xlu1 %315 }
 0x3c8   :  { %v318_v1 = vadd.f32 %v316_v0, %v287_v47  ;;  %v423_v47 = vld [vmem:[#allocation2 + $0x18] sm:$0xff] }
 0x3ca   :  { %1610 = vtanh.f32 %v318_v1 }
 0x3d0   :  { %v1611_v2 = vpop.eup %1610 }
 0x3d1   :  { %322 = vrot.lane.b32.xlu2 %v1611_v2, %s1832_s4 }
 0x42b   :  { %v323_v5 = vpop.permute.xlu2 %322 }
 0x42c   :  { %v325_v7 = vmul.f32 %v323_v5, %v320_v4 }
 0x42e   :  { %v327_v8 = vadd.f32 %v326_v6, %v325_v7 }
 0x430   :  { %329 = vrot.lane.b32.xlu0 %v327_v8, %s1832_s4 }
 0x4a2   :  { %v330_v13 = vpop.permute.xlu0 %329 }
 0x4a3   :  { %332 = vst.msk [vmem:[#allocation3 + $0x8] sm:$0xff] %vm187_vm1, %v330_v13  ;;  %1532 = vmatmul.msk.f32.vlgmr.msra.gmra.mxu3 %vm187_vm1, %v330_v13  ;;  %v161_v13 = vadd.f32 %v1987_v9, %v160_v11 }
 0x4a4   :  { %794 = vmatpush.msra.mxu3 %v753_v42 }
 0x4a5   :  { %177 = vst.msk [vmem:[#allocation2 + $0x20] sm:$0xff] %vm172_vm2, %v161_v13 }
 0x4a6   :  { %795 = vmatpush.msra.mxu3 %v752_v43 }
 0x526   :  { %v352_v14 = vpop.f32.mrf.mxu3 }
 0x527   :  { %v376_v15 = vadd.f32 %v352_v14, %v1990_v12  ;;  %v356_v17 = vadd.f32 %v355_v16, %v352_v14 }
 0x529   :  { %378 = vrot.lane.b32.xlu1 %v376_v15, %s1831_s3  ;;  %v1533_v18 = vmul.f32 -1.442695, %v356_v17 }
 0x52b   :  { %1612 = vpow2.f32 %v1533_v18 }
 0x531   :  { %v1613_v19 = vpop.eup %1612 }
 0x532   :  { %v360_v20 = vadd.f32 1.0, %v1613_v19 }
 0x534   :  { %1614 = vrcp.f32 %v360_v20  ;;  %v372_v26 = vand.u32 2147483648, %v360_v20  ;;  %vm366_vm12 = vweird.f32 %v360_v20  ;;  %v370_v27 = vand.u32 2147483647, %v360_v20 }
 0x536   :  { %v373_v29 = vor.u32 1.1754944e-38, %v372_v26  ;;  %vm371_vm14 = vcmp.eq.f32.partialorder %v370_v27, 8.507059e+37 }
 0x53a   :  { %v1615_v21 = vpop.eup %1614 }
 0x53b   :  { %v362_v22 = vmul.f32 %v1615_v21, %v360_v20  ;;  %vm367_vm11 = vweird.f32 %v1615_v21 }
 0x53c   :  { %vm368_vm13 = vmor %vm366_vm12, %vm367_vm11 }
 0x53d   :  { %v363_v23 = vsub.f32 1.0, %v362_v22 }
 0x53f   :  { %v364_v24 = vmul.f32 %v1615_v21, %v363_v23 }
 0x541   :  { %v365_v25 = vadd.f32 %v1615_v21, %v364_v24 }
 0x543   :  { %v369_v28 = vsel %vm368_vm13, %v1615_v21, %v365_v25 }
 0x544   :  { %v374_v31 = vsel %vm371_vm14, %v373_v29, %v369_v28 }
 0x545   :  { %v388_v37 = vsub.f32 1.0, %v374_v31  ;;  %v394_v39 = vmul.f32 %v374_v31, %v327_v8 }
 0x59b   :  { %v379_v30 = vpop.permute.xlu1 %378 }
 0x59c   :  { %v381_v32 = vmul.f32 %v379_v30, %v374_v31 }
 0x59e   :  { %383 = vrot.lane.b32.xlu2 %v381_v32, %s1831_s3 }
 0x5f8   :  { %v384_v33 = vpop.permute.xlu2 %383 }
 0x5f9   :  { %v386_v34 = vadd.f32 %v384_v33, %v355_v16  ;;  %v491_v16 = vld [vmem:[#allocation2 + $0x20] sm:$0xff] }
 0x5fb   :  { %1616 = vtanh.f32 %v386_v34 }
 0x601   :  { %v1617_v35 = vpop.eup %1616 }
 0x602   :  { %390 = vrot.lane.b32.xlu0 %v1617_v35, %s1832_s4 }
 0x674   :  { %v391_v38 = vpop.permute.xlu0 %390 }
 0x675   :  { %v393_v40 = vmul.f32 %v391_v38, %v388_v37 }
 0x677   :  { %v395_v41 = vadd.f32 %v394_v39, %v393_v40 }
 0x679   :  { %397 = vrot.lane.b32.xlu1 %v395_v41, %s1832_s4 }
 0x6eb   :  { %v398_v44 = vpop.permute.xlu1 %397 }
 0x6ec   :  { %400 = vst.msk [vmem:[#allocation3 + $0x10] sm:$0xff] %vm187_vm1, %v398_v44  ;;  %1534 = vmatmul.msk.f32.vlgmr.msrb.gmra.mxu1 %vm187_vm1, %v398_v44  ;;  %v751_v44 = vld [vmem:[%s2332_s6 + $0x8] sm:$0xff] }
 0x6ed   :  { %796 = vmatpush.msra.mxu3 %v751_v44 }
 0x769   :  { %v420_v45 = vpop.f32.mrf.mxu1 }
 0x76a   :  { %v444_v46 = vadd.f32 %v420_v45, %v1990_v12  ;;  %v424_v48 = vadd.f32 %v423_v47, %v420_v45  ;;  %v750_v45 = vld [vmem:[%s2332_s6] sm:$0xff] }
 0x76b   :  { %797 = vmatpush.msra.mxu3 %v750_v45 }
 0x76c   :  { %446 = vrot.lane.b32.xlu2 %v444_v46, %s1831_s3  ;;  %v1535_v49 = vmul.f32 -1.442695, %v424_v48  ;;  %v163_v48 = vpop.f32.mrf.mxu0 }
 0x76e   :  { %1618 = vpow2.f32 %v1535_v49  ;;  %v164_v49 = vadd.f32 %v1987_v9, %v163_v48 }
 0x770   :  { %178 = vst.msk [vmem:[#allocation2 + $0x28] sm:$0xff] %vm172_vm2, %v164_v49 }
 0x774   :  { %v1619_v50 = vpop.eup %1618 }
 0x775   :  { %v428_v51 = vadd.f32 1.0, %v1619_v50  ;;  %v743_v50 = vld [vmem:[#allocation3 + $0x8] sm:$0xff] }
 0x777   :  { %1620 = vrcp.f32 %v428_v51  ;;  %v440_v57 = vand.u32 2147483648, %v428_v51  ;;  %vm434_vm3 = vweird.f32 %v428_v51  ;;  %v438_v58 = vand.u32 2147483647, %v428_v51  ;;  %v559_v3 = vld [vmem:[#allocation2 + $0x28] sm:$0xff] }
 0x779   :  { %v441_v60 = vor.u32 1.1754944e-38, %v440_v57  ;;  %vm439_vm5 = vcmp.eq.f32.partialorder %v438_v58, 8.507059e+37 }
 0x77d   :  { %v1621_v52 = vpop.eup %1620 }
 0x77e   :  { %v430_v53 = vmul.f32 %v1621_v52, %v428_v51  ;;  %vm435_vm15 = vweird.f32 %v1621_v52  ;;  %v744_v51 = vld [vmem:[#allocation3 + $0x10] sm:$0xff] }
 0x77f   :  { %vm436_vm4 = vmor %vm434_vm3, %vm435_vm15 }
 0x780   :  { %v431_v54 = vsub.f32 1.0, %v430_v53 }
 0x782   :  { %v432_v55 = vmul.f32 %v1621_v52, %v431_v54 }
 0x784   :  { %v433_v56 = vadd.f32 %v1621_v52, %v432_v55 }
 0x786   :  { %v437_v59 = vsel %vm436_vm4, %v1621_v52, %v433_v56  ;;  %v2087_v56 = vld [vmem:[%s2334_s8] ss:$0 sm:$0xff] }
 0x787   :  { %v442_v62 = vsel %vm439_vm5, %v441_v60, %v437_v59 }
 0x788   :  { %v456_v4 = vsub.f32 1.0, %v442_v62  ;;  %v462_v6 = vmul.f32 %v442_v62, %v395_v41 }
 0x7c6   :  { %v447_v61 = vpop.permute.xlu2 %446 }
 0x7c7   :  { %v449_v63 = vmul.f32 %v447_v61, %v442_v62 }
 0x7c9   :  { %451 = vrot.lane.b32.xlu0 %v449_v63, %s1831_s3 }
 0x83b   :  { %v452_v0 = vpop.permute.xlu0 %451 }
 0x83c   :  { %v454_v1 = vadd.f32 %v452_v0, %v423_v47  ;;  %v742_v47 = vld [vmem:[#allocation3] sm:$0xff] }
 0x83e   :  { %1622 = vtanh.f32 %v454_v1 }
 0x844   :  { %v1623_v2 = vpop.eup %1622 }
 0x845   :  { %458 = vrot.lane.b32.xlu1 %v1623_v2, %s1832_s4 }
 0x8b7   :  { %v459_v5 = vpop.permute.xlu1 %458 }
 0x8b8   :  { %v461_v7 = vmul.f32 %v459_v5, %v456_v4 }
 0x8ba   :  { %v463_v8 = vadd.f32 %v462_v6, %v461_v7 }
 0x8bc   :  { %465 = vrot.lane.b32.xlu2 %v463_v8, %s1832_s4 }
 0x916   :  { %v466_v10 = vpop.permute.xlu2 %465 }
 0x917   :  { %468 = vst.msk [vmem:[#allocation3 + $0x18] sm:$0xff] %vm187_vm1, %v466_v10  ;;  %1536 = vmatmul.msk.f32.vlgmr.msrb.gmra.mxu2 %vm187_vm1, %v466_v10 }
 0x91e   :  { %v745_v52 = vld [vmem:[#allocation3 + $0x18] sm:$0xff] }
 0x99a   :  { %v488_v14 = vpop.f32.mrf.mxu2 }
 0x99b   :  { %v512_v15 = vadd.f32 %v488_v14, %v1990_v12  ;;  %v492_v17 = vadd.f32 %v491_v16, %v488_v14 }
 0x99d   :  { %514 = vrot.lane.b32.xlu0 %v512_v15, %s1831_s3  ;;  %v1537_v18 = vmul.f32 -1.442695, %v492_v17 }
 0x99f   :  { %1624 = vpow2.f32 %v1537_v18 }
 0x9a5   :  { %v1625_v19 = vpop.eup %1624 }
 0x9a6   :  { %v496_v20 = vadd.f32 1.0, %v1625_v19 }
 0x9a8   :  { %1626 = vrcp.f32 %v496_v20  ;;  %v508_v26 = vand.u32 2147483648, %v496_v20  ;;  %vm502_vm7 = vweird.f32 %v496_v20  ;;  %v506_v27 = vand.u32 2147483647, %v496_v20 }
 0x9aa   :  { %v509_v29 = vor.u32 1.1754944e-38, %v508_v26  ;;  %vm507_vm9 = vcmp.eq.f32.partialorder %v506_v27, 8.507059e+37 }
 0x9ae   :  { %v1627_v21 = vpop.eup %1626 }
 0x9af   :  { %v498_v22 = vmul.f32 %v1627_v21, %v496_v20  ;;  %vm503_vm6 = vweird.f32 %v1627_v21 }
 0x9b0   :  { %vm504_vm8 = vmor %vm502_vm7, %vm503_vm6 }
 0x9b1   :  { %v499_v23 = vsub.f32 1.0, %v498_v22 }
 0x9b3   :  { %v500_v24 = vmul.f32 %v1627_v21, %v499_v23 }
 0x9b5   :  { %v501_v25 = vadd.f32 %v1627_v21, %v500_v24 }
 0x9b7   :  { %v505_v28 = vsel %vm504_vm8, %v1627_v21, %v501_v25  ;;  %v98_v25 = vld [vmem:[%s2326_s0 + $0x30] sm:$0xff] }
 0x9b8   :  { %v510_v31 = vsel %vm507_vm9, %v509_v29, %v505_v28  ;;  %1526 = vmatmul.msk.f32.gmra.mxu0 %vm106_vm0, %v98_v25 }
 0x9b9   :  { %v524_v37 = vsub.f32 1.0, %v510_v31  ;;  %v530_v39 = vmul.f32 %v510_v31, %v463_v8 }
 0xa0f   :  { %v515_v30 = vpop.permute.xlu0 %514 }
 0xa10   :  { %v517_v32 = vmul.f32 %v515_v30, %v510_v31  ;;  %v2110_v31 = vld [vmem:[#allocation7 + $0x18] sm:$0xff] }
 0xa11   :  { %853 = vmatpush.msrb.mxu1 %v2110_v31  ;;  %929 = vmatpush.msrb.mxu2 %v2110_v31 }
 0xa12   :  { %519 = vrot.lane.b32.xlu1 %v517_v32, %s1831_s3  ;;  %v2112_v32 = vld [vmem:[#allocation7 + $0x10] sm:$0xff] }
 0xa13   :  { %854 = vmatpush.msrb.mxu1 %v2112_v32  ;;  %930 = vmatpush.msrb.mxu2 %v2112_v32 }
 0xa35   :  { %v166_v36 = vpop.f32.mrf.mxu0 }
 0xa84   :  { %v520_v33 = vpop.permute.xlu1 %519 }
 0xa85   :  { %v522_v34 = vadd.f32 %v520_v33, %v491_v16  ;;  %v2116_v33 = vld [vmem:[#allocation7 + $0x8] sm:$0xff] }
 0xa86   :  { %855 = vmatpush.msrb.mxu1 %v2116_v33  ;;  %931 = vmatpush.msrb.mxu2 %v2116_v33 }
 0xa87   :  { %1628 = vtanh.f32 %v522_v34  ;;  %v2120_v34 = vld [vmem:[#allocation7] sm:$0xff] }
 0xa88   :  { %856 = vmatpush.msrb.mxu1 %v2120_v34  ;;  %932 = vmatpush.msrb.mxu2 %v2120_v34 }
 0xa8d   :  { %v1629_v35 = vpop.eup %1628 }
 0xa8e   :  { %526 = vrot.lane.b32.xlu2 %v1629_v35, %s1832_s4  ;;  %v1598_v35 = vld [vmem:[%s2335_s9] ss:$0 sm:$0xff] }
 0xae8   :  { %v527_v38 = vpop.permute.xlu2 %526 }
 0xae9   :  { %v529_v40 = vmul.f32 %v527_v38, %v524_v37  ;;  %v167_v37 = vadd.f32 %v1987_v9, %v166_v36 }
 0xaeb   :  { %v2057_v41 = vadd.f32 %v530_v39, %v529_v40  ;;  %179 = vst.msk [vmem:[#allocation2 + $0x30] sm:$0xff] %vm172_vm2, %v167_v37  ;;  %v2139_v39 = vld [vmem:[%s2327_s1 + $0x8] sm:$0xff] }
 0xaed   :  { %533 = vrot.lane.b32.xlu0 %v2057_v41, %s1832_s4 }
 0xaf2   :  { %v627_v48 = vld [vmem:[#allocation2 + $0x30] sm:$0xff] }
 0xb5f   :  { %v534_v46 = vpop.permute.xlu0 %533 }
 0xb60   :  { %536 = vst.msk [vmem:[#allocation3 + $0x20] sm:$0xff] %vm187_vm1, %v534_v46  ;;  %1538 = vmatmul.msk.f32.vlgmr.msrb.gmra.mxu3 %vm187_vm1, %v534_v46 }
 0xb67   :  { %v746_v53 = vld [vmem:[#allocation3 + $0x20] sm:$0xff] }
 0xb68   :  { %1544 = vmatmul.msk.f32.vlgmr.msra.gmra.mxu3 %vm187_vm1, %v742_v47 }
 0xb70   :  { %1545 = vmatmul.msk.f32.gmra.mxu3 %vm187_vm1, %v743_v50 }
 0xb78   :  { %1546 = vmatmul.msk.f32.gmra.mxu3 %vm187_vm1, %v744_v51 }
 0xb80   :  { %1547 = vmatmul.msk.f32.gmra.mxu3 %vm187_vm1, %v745_v52 }
 0xb88   :  { %1548 = vmatmul.msk.f32.gmra.mxu3 %vm187_vm1, %v746_v53 }
 0xbe3   :  { %v556_v54 = vpop.f32.mrf.mxu3 }
 0xbe4   :  { %v580_v55 = vadd.f32 %v556_v54, %v1990_v12  ;;  %v560_v4 = vadd.f32 %v559_v3, %v556_v54 }
 0xbe6   :  { %582 = vrot.lane.b32.xlu1 %v580_v55, %s1831_s3  ;;  %v1539_v5 = vmul.f32 -1.442695, %v560_v4 }
 0xbe8   :  { %1630 = vpow2.f32 %v1539_v5 }
 0xbeb   :  { %v799_v57 = vpop.f32.mrf.mxu3 }
 0xbec   :  { %v800_v58 = vadd.f32 %v2087_v56, %v799_v57 }
 0xbee   :  { %823 = vst.msk [vmem:[#allocation2] sm:$0xff] %vm172_vm2, %v800_v58  ;;  %v1631_v6 = vpop.eup %1630 }
 0xbef   :  { %v564_v7 = vadd.f32 1.0, %v1631_v6 }
 0xbf1   :  { %1632 = vrcp.f32 %v564_v7  ;;  %v576_v15 = vand.u32 2147483648, %v564_v7  ;;  %vm570_vm11 = vweird.f32 %v564_v7  ;;  %v574_v16 = vand.u32 2147483647, %v564_v7 }
 0xbf3   :  { %v802_v59 = vpop.f32.mrf.mxu3  ;;  %v577_v18 = vor.u32 1.1754944e-38, %v576_v15  ;;  %vm575_vm13 = vcmp.eq.f32.partialorder %v574_v16, 8.507059e+37 }
 0xbf4   :  { %v803_v60 = vadd.f32 %v2087_v56, %v802_v59 }
 0xbf5   :  { %v861_v51 = vld [vmem:[#allocation2] sm:$0xff] }
 0xbf6   :  { %824 = vst.msk [vmem:[#allocation2 + $0x8] sm:$0xff] %vm172_vm2, %v803_v60 }
 0xbf7   :  { %v1633_v8 = vpop.eup %1632 }
 0xbf8   :  { %v566_v10 = vmul.f32 %v1633_v8, %v564_v7  ;;  %vm571_vm10 = vweird.f32 %v1633_v8 }
 0xbf9   :  { %vm572_vm12 = vmor %vm570_vm11, %vm571_vm10 }
 0xbfa   :  { %v567_v11 = vsub.f32 1.0, %v566_v10 }
 0xbfb   :  { %v805_v61 = vpop.f32.mrf.mxu3 }
 0xbfc   :  { %v806_v62 = vadd.f32 %v2087_v56, %v805_v61  ;;  %v568_v13 = vmul.f32 %v1633_v8, %v567_v11 }
 0xbfe   :  { %825 = vst.msk [vmem:[#allocation2 + $0x10] sm:$0xff] %vm172_vm2, %v806_v62  ;;  %v569_v14 = vadd.f32 %v1633_v8, %v568_v13 }
 0xc00   :  { %v573_v17 = vsel %vm572_vm12, %v1633_v8, %v569_v14 }
 0xc01   :  { %v578_v20 = vsel %vm575_vm13, %v577_v18, %v573_v17 }
 0xc02   :  { %v592_v26 = vsub.f32 1.0, %v578_v20  ;;  %v598_v28 = vmul.f32 %v578_v20, %v2057_v41 }
 0xc03   :  { %v808_v63 = vpop.f32.mrf.mxu3 }
 0xc04   :  { %v809_v0 = vadd.f32 %v2087_v56, %v808_v63 }
 0xc06   :  { %826 = vst.msk [vmem:[#allocation2 + $0x18] sm:$0xff] %vm172_vm2, %v809_v0 }
 0xc0b   :  { %v811_v1 = vpop.f32.mrf.mxu3 }
 0xc0c   :  { %v812_v2 = vadd.f32 %v2087_v56, %v811_v1 }
 0xc0e   :  { %827 = vst.msk [vmem:[#allocation2 + $0x20] sm:$0xff] %vm172_vm2, %v812_v2 }
 0xc58   :  { %v583_v19 = vpop.permute.xlu1 %582 }
 0xc59   :  { %v585_v21 = vmul.f32 %v583_v19, %v578_v20 }
 0xc5b   :  { %587 = vrot.lane.b32.xlu2 %v585_v21, %s1831_s3 }
 0xc63   :  { %884 = vrot.lane.b32.xlu2 %v1598_v35, %s1831_s3 }
 0xcb5   :  { %v588_v22 = vpop.permute.xlu2 %587 }
 0xcb6   :  { %v590_v23 = vadd.f32 %v588_v22, %v559_v3 }
 0xcb8   :  { %1634 = vtanh.f32 %v590_v23 }
 0xcbd   :  { %v2152_v43 = vpop.permute.xlu2 %884 }
 0xcbe   :  { %v1635_v24 = vpop.eup %1634 }
 0xcbf   :  { %594 = vrot.lane.b32.xlu0 %v1635_v24, %s1832_s4 }
 0xd31   :  { %v595_v27 = vpop.permute.xlu0 %594 }
 0xd32   :  { %v597_v29 = vmul.f32 %v595_v27, %v592_v26 }
 0xd34   :  { %v2106_v30 = vadd.f32 %v598_v28, %v597_v29 }
 0xd36   :  { %601 = vrot.lane.b32.xlu1 %v2106_v30, %s1832_s4 }
 0xda8   :  { %v602_v38 = vpop.permute.xlu1 %601 }
 0xda9   :  { %604 = vst.msk [vmem:[#allocation3 + $0x28] sm:$0xff] %vm187_vm1, %v602_v38  ;;  %1540 = vmatmul.msk.f32.vlgmr.msra.gmra.mxu1 %vm187_vm1, %v602_v38 }
 0xdaa   :  { %997 = vmatpush.msra.mxu1 %v2110_v31 }
 0xdac   :  { %998 = vmatpush.msra.mxu1 %v2112_v32 }
 0xdae   :  { %999 = vmatpush.msra.mxu1 %v2116_v33 }
 0xdb0   :  { %v747_v40 = vld [vmem:[#allocation3 + $0x28] sm:$0xff]  ;;  %1000 = vmatpush.msra.mxu1 %v2120_v34 }
 0xdb1   :  { %1549 = vmatmul.msk.f32.gmra.mxu3 %vm187_vm1, %v747_v40  ;;  %1553 = vmatmul.msk.f32.vlgmr.msrb.gmra.mxu1 %vm187_vm1, %v2139_v39 }
 0xdb2   :  { %1133 = vmatpush.msrb.mxu1 %v2110_v31 }
 0xdb4   :  { %1134 = vmatpush.msrb.mxu1 %v2112_v32 }
 0xdb6   :  { %1135 = vmatpush.msrb.mxu1 %v2116_v33 }
 0xdb8   :  { %1136 = vmatpush.msrb.mxu1 %v2120_v34 }
 0xe26   :  { %v624_v41 = vpop.f32.mrf.mxu1 }
 0xe27   :  { %v648_v42 = vadd.f32 %v624_v41, %v1990_v12  ;;  %v628_v49 = vadd.f32 %v627_v48, %v624_v41 }
 0xe29   :  { %650 = vrot.lane.b32.xlu0 %v648_v42, %s1831_s3  ;;  %v1541_v50 = vmul.f32 -1.442695, %v628_v49 }
 0xe2b   :  { %1636 = vpow2.f32 %v1541_v50 }
 0xe2e   :  { %v858_v44 = vpop.f32.mrf.mxu1 }
 0xe2f   :  { %v887_v45 = vadd.f32 %v2152_v43, %v858_v44  ;;  %v862_v52 = vadd.f32 %v861_v51, %v858_v44  ;;  %v2177_v44 = vld [vmem:[#allocation9 + $0x18] sm:$0xff] }
 0xe30   :  { %1445 = vmatpush.msrb.mxu0 %v2177_v44 }
 0xe31   :  { %889 = vrot.lane.b32.xlu1 %v887_v45, %s1831_s3  ;;  %v1554_v53 = vmul.f32 -1.442695, %v862_v52  ;;  %v1637_v54 = vpop.eup %1636  ;;  %v2179_v45 = vld [vmem:[#allocation9 + $0x10] sm:$0xff] }
 0xe32   :  { %v632_v55 = vadd.f32 1.0, %v1637_v54  ;;  %1446 = vmatpush.msrb.mxu0 %v2179_v45  ;;  %v2208_v54 = vld [vmem:[%s2337_s11] ss:$0 sm:$0xff] }
 0xe33   :  { %1638 = vpow2.f32 %v1554_v53 }
 0xe34   :  { %v814_v46 = vpop.f32.mrf.mxu3  ;;  %1640 = vrcp.f32 %v632_v55  ;;  %v644_v3 = vand.u32 2147483648, %v632_v55  ;;  %vm638_vm15 = vweird.f32 %v632_v55  ;;  %v642_v4 = vand.u32 2147483647, %v632_v55 }
 0xe35   :  { %v815_v47 = vadd.f32 %v2087_v56, %v814_v46  ;;  %v2182_v46 = vld [vmem:[#allocation9 + $0x8] sm:$0xff] }
 0xe36   :  { %v645_v7 = vor.u32 1.1754944e-38, %v644_v3  ;;  %vm643_vm4 = vcmp.eq.f32.partialorder %v642_v4, 8.507059e+37  ;;  %1447 = vmatpush.msrb.mxu0 %v2182_v46 }
 0xe37   :  { %828 = vst.msk [vmem:[#allocation2 + $0x28] sm:$0xff] %vm172_vm2, %v815_v47  ;;  %v2185_v47 = vld [vmem:[#allocation9] sm:$0xff] }
 0xe38   :  { %1448 = vmatpush.msrb.mxu0 %v2185_v47 }
 0xe39   :  { %v1639_v57 = vpop.eup %1638 }
 0xe3a   :  { %v866_v58 = vadd.f32 1.0, %v1639_v57  ;;  %v1641_v59 = vpop.eup %1640 }
 0xe3b   :  { %v634_v60 = vmul.f32 %v1641_v59, %v632_v55  ;;  %vm639_vm14 = vweird.f32 %v1641_v59 }
 0xe3c   :  { %1642 = vrcp.f32 %v866_v58  ;;  %vm640_vm3 = vmor %vm638_vm15, %vm639_vm14  ;;  %v878_v14 = vand.u32 2147483648, %v866_v58  ;;  %vm872_vm6 = vweird.f32 %v866_v58  ;;  %v876_v15 = vand.u32 2147483647, %v866_v58 }
 0xe3d   :  { %v635_v61 = vsub.f32 1.0, %v634_v60 }
 0xe3e   :  { %v879_v17 = vor.u32 1.1754944e-38, %v878_v14  ;;  %vm877_vm8 = vcmp.eq.f32.partialorder %v876_v15, 8.507059e+37 }
 0xe3f   :  { %v636_v63 = vmul.f32 %v1641_v59, %v635_v61 }
 0xe41   :  { %v637_v1 = vadd.f32 %v1641_v59, %v636_v63 }
 0xe42   :  { %v1643_v62 = vpop.eup %1642 }
 0xe43   :  { %v868_v0 = vmul.f32 %v1643_v62, %v866_v58  ;;  %v641_v5 = vsel %vm640_vm3, %v1641_v59, %v637_v1  ;;  %vm873_vm5 = vweird.f32 %v1643_v62 }
 0xe44   :  { %v646_v10 = vsel %vm643_vm4, %v645_v7, %v641_v5  ;;  %vm874_vm7 = vmor %vm872_vm6, %vm873_vm5 }
 0xe45   :  { %v869_v2 = vsub.f32 1.0, %v868_v0  ;;  %v660_v27 = vsub.f32 1.0, %v646_v10  ;;  %v666_v29 = vmul.f32 %v646_v10, %v2106_v30  ;;  %v99_v30 = vld [vmem:[%s2326_s0 + $0x38] sm:$0xff] }
 0xe46   :  { %1527 = vmatmul.msk.f32.gmra.mxu0 %vm106_vm0, %v99_v30 }
 0xe47   :  { %v870_v6 = vmul.f32 %v1643_v62, %v869_v2 }
 0xe49   :  { %v871_v13 = vadd.f32 %v1643_v62, %v870_v6 }
 0xe4b   :  { %v875_v16 = vsel %vm874_vm7, %v1643_v62, %v871_v13 }
 0xe4c   :  { %v880_v19 = vsel %vm877_vm8, %v879_v17, %v875_v16 }
 0xe4d   :  { %v899_v38 = vsub.f32 1.0, %v880_v19 }
 0xe9b   :  { %v651_v8 = vpop.permute.xlu0 %650 }
 0xe9c   :  { %v653_v11 = vmul.f32 %v651_v8, %v646_v10 }
 0xe9e   :  { %655 = vrot.lane.b32.xlu2 %v653_v11, %s1831_s3 }
 0xea3   :  { %v890_v18 = vpop.permute.xlu1 %889 }
 0xea4   :  { %v892_v20 = vmul.f32 %v890_v18, %v880_v19 }
 0xea6   :  { %894 = vrot.lane.b32.xlu0 %v892_v20, %s1831_s3 }
 0xeae   :  { %905 = vrot.lane.b32.xlu0 %v2139_v39, %s1830_s21 }
 0xec3   :  { %v169_v52 = vpop.f32.mrf.mxu0 }
 0xec4   :  { %v170_v53 = vadd.f32 %v1987_v9, %v169_v52  ;;  %v937_v9 = vld [vmem:[#allocation2 + $0x8] sm:$0xff] }
 0xec6   :  { %180 = vst.msk [vmem:[#allocation2 + $0x38] sm:$0xff] %vm172_vm2, %v170_v53 }
 0xef8   :  { %v656_v21 = vpop.permute.xlu2 %655 }
 0xef9   :  { %v658_v22 = vadd.f32 %v656_v21, %v627_v48 }
 0xefb   :  { %1644 = vtanh.f32 %v658_v22 }
 0xf01   :  { %v1645_v23 = vpop.eup %1644 }
 0xf02   :  { %662 = vrot.lane.b32.xlu1 %v1645_v23, %s1832_s4 }
 0xf18   :  { %v895_v24 = vpop.permute.xlu0 %894 }
 0xf19   :  { %v897_v25 = vadd.f32 %v895_v24, %v861_v51 }
 0xf1b   :  { %1646 = vtanh.f32 %v897_v25 }
 0xf20   :  { %v906_v37 = vpop.permute.xlu0 %905 }
 0xf21   :  { %v1647_v26 = vpop.eup %1646  ;;  %v908_v40 = vmul.f32 %v906_v37, %v880_v19 }
 0xf22   :  { %901 = vrot.lane.b32.xlu2 %v1647_v26, %s1832_s4 }
 0xf74   :  { %v663_v28 = vpop.permute.xlu1 %662 }
 0xf75   :  { %v665_v35 = vmul.f32 %v663_v28, %v660_v27 }
 0xf77   :  { %v2165_v36 = vadd.f32 %v666_v29, %v665_v35  ;;  %v1005_v35 = vld [vmem:[#allocation2 + $0x10] sm:$0xff] }
 0xf79   :  { %669 = vrot.lane.b32.xlu1 %v2165_v36, %s1832_s4 }
 0xf7c   :  { %v902_v39 = vpop.permute.xlu2 %901 }
 0xf7d   :  { %v904_v41 = vmul.f32 %v902_v39, %v899_v38 }
 0xf7f   :  { %v2169_v42 = vadd.f32 %v908_v40, %v904_v41 }
 0xf81   :  { %911 = vrot.lane.b32.xlu2 %v2169_v42, %s1832_s4 }
 0xfdb   :  { %v912_v48 = vpop.permute.xlu2 %911 }
 0xfdc   :  { %914 = vst.msk [vmem:[#allocation3] sm:$0xff] %vm187_vm1, %v912_v48 }
 0xfe3   :  { %v1393_v49 = vld [vmem:[#allocation3] sm:$0xff] }
 0xfe4   :  { %1569 = vmatmul.msk.f32.vlgmr.msrb.gmra.mxu0 %vm187_vm1, %v1393_v49 }
 0xfeb   :  { %v670_v50 = vpop.permute.xlu1 %669 }
 0xfec   :  { %672 = vst.msk [vmem:[#allocation3 + $0x30] sm:$0xff] %vm187_vm1, %v670_v50  ;;  %1542 = vmatmul.msk.f32.vlgmr.msra.gmra.mxu2 %vm187_vm1, %v670_v50 }
 0xfed   :  { %1065 = vmatpush.msra.mxu2 %v2110_v31 }
 0xfef   :  { %1066 = vmatpush.msra.mxu2 %v2112_v32 }
 0xff1   :  { %1067 = vmatpush.msra.mxu2 %v2116_v33 }
 0xff3   :  { %v748_v51 = vld [vmem:[#allocation3 + $0x30] sm:$0xff]  ;;  %1068 = vmatpush.msra.mxu2 %v2120_v34 }
 0xff4   :  { %1550 = vmatmul.msk.f32.gmra.mxu3 %vm187_vm1, %v748_v51  ;;  %1555 = vmatmul.msk.f32.vlgmr.msrb.gmra.mxu2 %vm187_vm1, %v912_v48 }
 0xff5   :  { %1201 = vmatpush.msrb.mxu2 %v2110_v31 }
 0xff7   :  { %1202 = vmatpush.msrb.mxu2 %v2112_v32 }
 0xff9   :  { %1203 = vmatpush.msrb.mxu2 %v2116_v33 }
 0xffb   :  { %1204 = vmatpush.msrb.mxu2 %v2120_v34 }
0x1061   :  { %v1450_v55 = vpop.f32.mrf.mxu0 }
0x1062   :  { %v1451_v57 = vadd.f32 %v2208_v54, %v1450_v55 }
0x1064   :  { %1474 = vst [vmem:[#allocation10] sm:$0xff] %v1451_v57 }
0x106f   :  { %v2211_v58 = vpop.f32.mrf.mxu2 }
0x1077   :  { %v817_v59 = vpop.f32.mrf.mxu3  ;;  %v934_v60 = vpop.f32.mrf.mxu2 }
0x1078   :  { %v818_v61 = vadd.f32 %v2087_v56, %v817_v59  ;;  %v958_v62 = vadd.f32 %v934_v60, %v2152_v43  ;;  %v938_v63 = vadd.f32 %v937_v9, %v934_v60 }
0x107a   :  { %829 = vst.msk [vmem:[#allocation2 + $0x30] sm:$0xff] %vm172_vm2, %v818_v61  ;;  %960 = vrot.lane.b32.xlu0 %v958_v62, %s1831_s3  ;;  %v1556_v0 = vmul.f32 -1.442695, %v938_v63 }
0x107c   :  { %1648 = vpow2.f32 %v1556_v0 }
0x1082   :  { %v1649_v1 = vpop.eup %1648 }
0x1083   :  { %v942_v2 = vadd.f32 1.0, %v1649_v1 }
0x1085   :  { %1650 = vrcp.f32 %v942_v2  ;;  %v954_v56 = vand.u32 2147483648, %v942_v2  ;;  %vm948_vm9 = vweird.f32 %v942_v2  ;;  %v952_v8 = vand.u32 2147483647, %v942_v2 }
0x1087   :  { %v955_v11 = vor.u32 1.1754944e-38, %v954_v56  ;;  %vm953_vm11 = vcmp.eq.f32.partialorder %v952_v8, 8.507059e+37 }
0x108b   :  { %v1651_v3 = vpop.eup %1650 }
0x108c   :  { %v944_v4 = vmul.f32 %v1651_v3, %v942_v2  ;;  %vm949_vm0 = vweird.f32 %v1651_v3 }
0x108d   :  { %vm950_vm10 = vmor %vm948_vm9, %vm949_vm0 }
0x108e   :  { %v945_v5 = vsub.f32 1.0, %v944_v4 }
0x1090   :  { %v946_v6 = vmul.f32 %v1651_v3, %v945_v5 }
0x1092   :  { %v947_v7 = vadd.f32 %v1651_v3, %v946_v6  ;;  %v1073_v6 = vld [vmem:[#allocation2 + $0x18] sm:$0xff] }
0x1094   :  { %v951_v10 = vsel %vm950_vm10, %v1651_v3, %v947_v7 }
0x1095   :  { %v956_v14 = vsel %vm953_vm11, %v955_v11, %v951_v10 }
0x1096   :  { %v970_v19 = vsub.f32 1.0, %v956_v14  ;;  %v976_v21 = vmul.f32 %v956_v14, %v2169_v42 }
0x10ec   :  { %v961_v13 = vpop.permute.xlu0 %960 }
0x10ed   :  { %v963_v15 = vmul.f32 %v961_v13, %v956_v14 }
0x10ef   :  { %965 = vrot.lane.b32.xlu1 %v963_v15, %s1831_s3 }
0x1161   :  { %v966_v16 = vpop.permute.xlu1 %965 }
0x1162   :  { %v968_v17 = vadd.f32 %v966_v16, %v937_v9 }
0x1164   :  { %1652 = vtanh.f32 %v968_v17 }
0x116a   :  { %v1653_v18 = vpop.eup %1652 }
0x116b   :  { %972 = vrot.lane.b32.xlu2 %v1653_v18, %s1832_s4 }
0x11c5   :  { %v973_v20 = vpop.permute.xlu2 %972 }
0x11c6   :  { %v975_v22 = vmul.f32 %v973_v20, %v970_v19 }
0x11c8   :  { %v977_v23 = vadd.f32 %v976_v21, %v975_v22 }
0x11ca   :  { %979 = vrot.lane.b32.xlu0 %v977_v23, %s1832_s4 }
0x123c   :  { %v980_v24 = vpop.permute.xlu0 %979 }
0x123d   :  { %982 = vst.msk [vmem:[#allocation3 + $0x8] sm:$0xff] %vm187_vm1, %v980_v24  ;;  %1557 = vmatmul.msk.f32.vlgmr.msra.gmra.mxu1 %vm187_vm1, %v980_v24 }
0x123e   :  { %1269 = vmatpush.msra.mxu1 %v2110_v31 }
0x1240   :  { %1270 = vmatpush.msra.mxu1 %v2112_v32 }
0x1242   :  { %1271 = vmatpush.msra.mxu1 %v2116_v33 }
0x1244   :  { %v1394_v25 = vld [vmem:[#allocation3 + $0x8] sm:$0xff]  ;;  %1272 = vmatpush.msra.mxu1 %v2120_v34 }
0x1245   :  { %1570 = vmatmul.msk.f32.gmra.mxu0 %vm187_vm1, %v1394_v25 }
0x12ba   :  { %v1002_v26 = vpop.f32.mrf.mxu1 }
0x12bb   :  { %v1026_v27 = vadd.f32 %v1002_v26, %v2152_v43  ;;  %v1006_v37 = vadd.f32 %v1005_v35, %v1002_v26 }
0x12bd   :  { %1028 = vrot.lane.b32.xlu1 %v1026_v27, %s1831_s3  ;;  %v1558_v38 = vmul.f32 -1.442695, %v1006_v37  ;;  %v1141_v37 = vld [vmem:[#allocation2 + $0x20] sm:$0xff] }
0x12bf   :  { %1654 = vpow2.f32 %v1558_v38 }
0x12c2   :  { %v1453_v28 = vpop.f32.mrf.mxu0 }
0x12c3   :  { %v1454_v29 = vadd.f32 %v2208_v54, %v1453_v28 }
0x12c5   :  { %1475 = vst [vmem:[#allocation10 + $0x8] sm:$0xff] %v1454_v29  ;;  %v1655_v39 = vpop.eup %1654 }
0x12c6   :  { %v1010_v40 = vadd.f32 1.0, %v1655_v39 }
0x12c8   :  { %1656 = vrcp.f32 %v1010_v40  ;;  %v1022_v50 = vand.u32 2147483648, %v1010_v40  ;;  %vm1016_vm13 = vweird.f32 %v1010_v40  ;;  %v1020_v51 = vand.u32 2147483647, %v1010_v40 }
0x12ca   :  { %v1023_v53 = vor.u32 1.1754944e-38, %v1022_v50  ;;  %vm1021_vm15 = vcmp.eq.f32.partialorder %v1020_v51, 8.507059e+37 }
0x12ce   :  { %v1657_v41 = vpop.eup %1656 }
0x12cf   :  { %v1012_v42 = vmul.f32 %v1657_v41, %v1010_v40  ;;  %vm1017_vm12 = vweird.f32 %v1657_v41 }
0x12d0   :  { %vm1018_vm14 = vmor %vm1016_vm13, %vm1017_vm12 }
0x12d1   :  { %v1013_v30 = vsub.f32 1.0, %v1012_v42 }
0x12d3   :  { %v1014_v48 = vmul.f32 %v1657_v41, %v1013_v30 }
0x12d5   :  { %v1015_v49 = vadd.f32 %v1657_v41, %v1014_v48 }
0x12d7   :  { %v1019_v52 = vsel %vm1018_vm14, %v1657_v41, %v1015_v49 }
0x12d8   :  { %v1024_v57 = vsel %vm1021_vm15, %v1023_v53, %v1019_v52 }
0x12d9   :  { %v1038_v9 = vsub.f32 1.0, %v1024_v57  ;;  %v1044_v0 = vmul.f32 %v1024_v57, %v977_v23 }
0x132f   :  { %v1029_v55 = vpop.permute.xlu1 %1028 }
0x1330   :  { %v1031_v59 = vmul.f32 %v1029_v55, %v1024_v57 }
0x1332   :  { %1033 = vrot.lane.b32.xlu2 %v1031_v59, %s1831_s3 }
0x138c   :  { %v1034_v60 = vpop.permute.xlu2 %1033 }
0x138d   :  { %v1036_v61 = vadd.f32 %v1034_v60, %v1005_v35 }
0x138f   :  { %1658 = vtanh.f32 %v1036_v61 }
0x1395   :  { %v1659_v62 = vpop.eup %1658 }
0x1396   :  { %1040 = vrot.lane.b32.xlu0 %v1659_v62, %s1832_s4 }
0x1408   :  { %v1041_v63 = vpop.permute.xlu0 %1040 }
0x1409   :  { %v1043_v1 = vmul.f32 %v1041_v63, %v1038_v9 }
0x140b   :  { %v1045_v2 = vadd.f32 %v1044_v0, %v1043_v1 }
0x140d   :  { %1047 = vrot.lane.b32.xlu1 %v1045_v2, %s1832_s4 }
0x147f   :  { %v1048_v3 = vpop.permute.xlu1 %1047 }
0x1480   :  { %1050 = vst.msk [vmem:[#allocation3 + $0x10] sm:$0xff] %vm187_vm1, %v1048_v3  ;;  %1559 = vmatmul.msk.f32.vlgmr.msra.gmra.mxu2 %vm187_vm1, %v1048_v3 }
0x1481   :  { %1337 = vmatpush.msra.mxu2 %v2110_v31 }
0x1483   :  { %1338 = vmatpush.msra.mxu2 %v2112_v32 }
0x1485   :  { %1339 = vmatpush.msra.mxu2 %v2116_v33 }
0x1487   :  { %1340 = vmatpush.msra.mxu2 %v2120_v34 }
0x1503   :  { %v1070_v4 = vpop.f32.mrf.mxu2 }
0x1504   :  { %v1094_v5 = vadd.f32 %v1070_v4, %v2152_v43  ;;  %v1074_v7 = vadd.f32 %v1073_v6, %v1070_v4 }
0x1506   :  { %1096 = vrot.lane.b32.xlu2 %v1094_v5, %s1831_s3  ;;  %v1560_v56 = vmul.f32 -1.442695, %v1074_v7  ;;  %v1209_v7 = vld [vmem:[#allocation2 + $0x28] sm:$0xff] }
0x1508   :  { %1660 = vpow2.f32 %v1560_v56 }
0x150e   :  { %v1661_v8 = vpop.eup %1660 }
0x150f   :  { %v1078_v10 = vadd.f32 1.0, %v1661_v8 }
0x1511   :  { %1662 = vrcp.f32 %v1078_v10  ;;  %v1090_v33 = vand.u32 2147483648, %v1078_v10  ;;  %vm1084_vm4 = vweird.f32 %v1078_v10  ;;  %v1088_v34 = vand.u32 2147483647, %v1078_v10 }
0x1513   :  { %v1091_v16 = vor.u32 1.1754944e-38, %v1090_v33  ;;  %vm1089_vm6 = vcmp.eq.f32.partialorder %v1088_v34, 8.507059e+37 }
0x1517   :  { %v1663_v11 = vpop.eup %1662 }
0x1518   :  { %v1080_v31 = vmul.f32 %v1663_v11, %v1078_v10  ;;  %vm1085_vm3 = vweird.f32 %v1663_v11 }
0x1519   :  { %vm1086_vm5 = vmor %vm1084_vm4, %vm1085_vm3 }
0x151a   :  { %v1081_v13 = vsub.f32 1.0, %v1080_v31 }
0x151c   :  { %v1082_v32 = vmul.f32 %v1663_v11, %v1081_v13 }
0x151e   :  { %v1083_v14 = vadd.f32 %v1663_v11, %v1082_v32 }
0x1520   :  { %v1087_v15 = vsel %vm1086_vm5, %v1663_v11, %v1083_v14 }
0x1521   :  { %v1092_v18 = vsel %vm1089_vm6, %v1091_v16, %v1087_v15 }
0x1522   :  { %v1106_v23 = vsub.f32 1.0, %v1092_v18  ;;  %v1112_v25 = vmul.f32 %v1092_v18, %v1045_v2 }
0x1560   :  { %v1097_v17 = vpop.permute.xlu2 %1096 }
0x1561   :  { %v1099_v19 = vmul.f32 %v1097_v17, %v1092_v18  ;;  %v716_v17 = vadd.f32 %v2211_v58, %v1990_v12 }
0x1563   :  { %1101 = vrot.lane.b32.xlu0 %v1099_v19, %s1831_s3 }
0x15d5   :  { %v1102_v20 = vpop.permute.xlu0 %1101 }
0x15d6   :  { %v1104_v21 = vadd.f32 %v1102_v20, %v1073_v6 }
0x15d8   :  { %1664 = vtanh.f32 %v1104_v21  ;;  %v695_v21 = vld [vmem:[#allocation2 + $0x38] sm:$0xff] }
0x15de   :  { %v1665_v22 = vpop.eup %1664 }
0x15df   :  { %1108 = vrot.lane.b32.xlu1 %v1665_v22, %s1832_s4  ;;  %v696_v22 = vadd.f32 %v695_v21, %v2211_v58 }
0x1651   :  { %v1109_v24 = vpop.permute.xlu1 %1108 }
0x1652   :  { %v1111_v26 = vmul.f32 %v1109_v24, %v1106_v23  ;;  %v1543_v23 = vmul.f32 -1.442695, %v696_v22 }
0x1654   :  { %v1113_v27 = vadd.f32 %v1112_v25, %v1111_v26 }
0x1656   :  { %1115 = vrot.lane.b32.xlu2 %v1113_v27, %s1832_s4 }
0x16b0   :  { %v1116_v28 = vpop.permute.xlu2 %1115 }
0x16b1   :  { %1118 = vst.msk [vmem:[#allocation3 + $0x18] sm:$0xff] %vm187_vm1, %v1116_v28  ;;  %1561 = vmatmul.msk.f32.vlgmr.msrb.gmra.mxu1 %vm187_vm1, %v1116_v28 }
0x16b2   :  { %1577 = vmatpush.msrb.mxu1 %v2177_v44 }
0x16b4   :  { %1579 = vmatpush.msrb.mxu1 %v2179_v45 }
0x16b6   :  { %1581 = vmatpush.msrb.mxu1 %v2182_v46 }
0x16b8   :  { %1583 = vmatpush.msrb.mxu1 %v2185_v47 }
0x172e   :  { %v1138_v29 = vpop.f32.mrf.mxu1 }
0x172f   :  { %v1162_v35 = vadd.f32 %v1138_v29, %v2152_v43  ;;  %v1142_v38 = vadd.f32 %v1141_v37, %v1138_v29 }
0x1731   :  { %1164 = vrot.lane.b32.xlu0 %v1162_v35, %s1831_s3  ;;  %v1562_v39 = vmul.f32 -1.442695, %v1142_v38 }
0x1733   :  { %1666 = vpow2.f32 %v1562_v39 }
0x1739   :  { %v1667_v40 = vpop.eup %1666 }
0x173a   :  { %v1146_v41 = vadd.f32 1.0, %v1667_v40 }
0x173c   :  { %1668 = vrcp.f32 %v1146_v41  ;;  %v1158_v51 = vand.u32 2147483648, %v1146_v41  ;;  %vm1152_vm8 = vweird.f32 %v1146_v41  ;;  %v1156_v52 = vand.u32 2147483647, %v1146_v41 }
0x173e   :  { %v1159_v55 = vor.u32 1.1754944e-38, %v1158_v51  ;;  %vm1157_vm9 = vcmp.eq.f32.partialorder %v1156_v52, 8.507059e+37  ;;  %v1395_v52 = vld [vmem:[#allocation3 + $0x10] sm:$0xff] }
0x1742   :  { %v1669_v42 = vpop.eup %1668 }
0x1743   :  { %v1148_v30 = vmul.f32 %v1669_v42, %v1146_v41  ;;  %vm1153_vm7 = vweird.f32 %v1669_v42 }
0x1744   :  { %vm1154_vm0 = vmor %vm1152_vm8, %vm1153_vm7 }
0x1745   :  { %v1149_v48 = vsub.f32 1.0, %v1148_v30 }
0x1747   :  { %v1150_v49 = vmul.f32 %v1669_v42, %v1149_v48 }
0x1749   :  { %v1151_v50 = vadd.f32 %v1669_v42, %v1150_v49 }
0x174b   :  { %v1155_v53 = vsel %vm1154_vm0, %v1669_v42, %v1151_v50 }
0x174c   :  { %v1160_v59 = vsel %vm1157_vm9, %v1159_v55, %v1155_v53  ;;  %v1396_v53 = vld [vmem:[#allocation3 + $0x18] sm:$0xff] }
0x174d   :  { %v1174_v63 = vsub.f32 1.0, %v1160_v59  ;;  %v1180_v1 = vmul.f32 %v1160_v59, %v1113_v27 }
0x17a3   :  { %v1165_v57 = vpop.permute.xlu0 %1164 }
0x17a4   :  { %v1167_v60 = vmul.f32 %v1165_v57, %v1160_v59 }
0x17a6   :  { %1169 = vrot.lane.b32.xlu1 %v1167_v60, %s1831_s3 }
0x1818   :  { %v1170_v61 = vpop.permute.xlu1 %1169 }
0x1819   :  { %v1172_v62 = vadd.f32 %v1170_v61, %v1141_v37 }
0x181b   :  { %1670 = vtanh.f32 %v1172_v62 }
0x1821   :  { %v1671_v9 = vpop.eup %1670 }
0x1822   :  { %1176 = vrot.lane.b32.xlu2 %v1671_v9, %s1832_s4 }
0x187c   :  { %v1177_v0 = vpop.permute.xlu2 %1176 }
0x187d   :  { %v1179_v2 = vmul.f32 %v1177_v0, %v1174_v63 }
0x187f   :  { %v1181_v3 = vadd.f32 %v1180_v1, %v1179_v2 }
0x1881   :  { %1183 = vrot.lane.b32.xlu0 %v1181_v3, %s1832_s4 }
0x18f3   :  { %v1184_v4 = vpop.permute.xlu0 %1183 }
0x18f4   :  { %1186 = vst.msk [vmem:[#allocation3 + $0x20] sm:$0xff] %vm187_vm1, %v1184_v4  ;;  %1563 = vmatmul.msk.f32.vlgmr.msrb.gmra.mxu2 %vm187_vm1, %v1184_v4  ;;  %v1277_v4 = vld [vmem:[#allocation2 + $0x30] sm:$0xff] }
0x18f5   :  { %1578 = vmatpush.msrb.mxu2 %v2177_v44 }
0x18f7   :  { %1580 = vmatpush.msrb.mxu2 %v2179_v45 }
0x18f9   :  { %1582 = vmatpush.msrb.mxu2 %v2182_v46 }
0x18fb   :  { %1584 = vmatpush.msrb.mxu2 %v2185_v47  ;;  %v1397_v55 = vld [vmem:[#allocation3 + $0x20] sm:$0xff] }
0x1977   :  { %v1206_v5 = vpop.f32.mrf.mxu2 }
0x1978   :  { %v1230_v6 = vadd.f32 %v1206_v5, %v2152_v43  ;;  %v1210_v56 = vadd.f32 %v1209_v7, %v1206_v5 }
0x197a   :  { %1232 = vrot.lane.b32.xlu1 %v1230_v6, %s1831_s3  ;;  %v1564_v8 = vmul.f32 -1.442695, %v1210_v56 }
0x197c   :  { %1672 = vpow2.f32 %v1564_v8 }
0x1982   :  { %v1673_v10 = vpop.eup %1672 }
0x1983   :  { %v1214_v11 = vadd.f32 1.0, %v1673_v10 }
0x1985   :  { %1674 = vrcp.f32 %v1214_v11  ;;  %v1226_v46 = vand.u32 2147483648, %v1214_v11  ;;  %vm1220_vm11 = vweird.f32 %v1214_v11  ;;  %v1224_v47 = vand.u32 2147483647, %v1214_v11 }
0x1987   :  { %v1227_v33 = vor.u32 1.1754944e-38, %v1226_v46  ;;  %vm1225_vm13 = vcmp.eq.f32.partialorder %v1224_v47, 8.507059e+37 }
0x198b   :  { %v1675_v31 = vpop.eup %1674 }
0x198c   :  { %v1216_v44 = vmul.f32 %v1675_v31, %v1214_v11  ;;  %vm1221_vm10 = vweird.f32 %v1675_v31 }
0x198d   :  { %vm1222_vm12 = vmor %vm1220_vm11, %vm1221_vm10 }
0x198e   :  { %v1217_v13 = vsub.f32 1.0, %v1216_v44 }
0x1990   :  { %v1218_v45 = vmul.f32 %v1675_v31, %v1217_v13 }
0x1992   :  { %v1219_v32 = vadd.f32 %v1675_v31, %v1218_v45 }
0x1994   :  { %v1223_v14 = vsel %vm1222_vm12, %v1675_v31, %v1219_v32 }
0x1995   :  { %v1228_v15 = vsel %vm1225_vm13, %v1227_v33, %v1223_v14 }
0x1996   :  { %v1242_v29 = vsub.f32 1.0, %v1228_v15  ;;  %v1248_v37 = vmul.f32 %v1228_v15, %v1181_v3 }
0x19ec   :  { %v1233_v34 = vpop.permute.xlu1 %1232 }
0x19ed   :  { %v1235_v16 = vmul.f32 %v1233_v34, %v1228_v15 }
0x19ef   :  { %1237 = vrot.lane.b32.xlu2 %v1235_v16, %s1831_s3 }
0x19f7   :  { %718 = vrot.lane.b32.xlu2 %v716_v17, %s1831_s3 }
0x1a49   :  { %v1238_v18 = vpop.permute.xlu2 %1237 }
0x1a4a   :  { %v1240_v19 = vadd.f32 %v1238_v18, %v1209_v7 }
0x1a4c   :  { %1676 = vtanh.f32 %v1240_v19 }
0x1a4d   :  { %1678 = vpow2.f32 %v1543_v23 }
0x1a51   :  { %v719_v48 = vpop.permute.xlu2 %718 }
0x1a52   :  { %v1677_v20 = vpop.eup %1676 }
0x1a53   :  { %1244 = vrot.lane.b32.xlu0 %v1677_v20, %s1832_s4  ;;  %v1679_v24 = vpop.eup %1678 }
0x1a54   :  { %v700_v25 = vadd.f32 1.0, %v1679_v24 }
0x1a56   :  { %1680 = vrcp.f32 %v700_v25  ;;  %v712_v41 = vand.u32 2147483648, %v700_v25  ;;  %vm706_vm15 = vweird.f32 %v700_v25  ;;  %v710_v58 = vand.u32 2147483647, %v700_v25 }
0x1a58   :  { %v713_v30 = vor.u32 1.1754944e-38, %v712_v41  ;;  %vm711_vm4 = vcmp.eq.f32.partialorder %v710_v58, 8.507059e+37 }
0x1a5c   :  { %v1681_v26 = vpop.eup %1680 }
0x1a5d   :  { %v702_v27 = vmul.f32 %v1681_v26, %v700_v25  ;;  %vm707_vm14 = vweird.f32 %v1681_v26 }
0x1a5e   :  { %vm708_vm3 = vmor %vm706_vm15, %vm707_vm14 }
0x1a5f   :  { %v703_v28 = vsub.f32 1.0, %v702_v27 }
0x1a61   :  { %v704_v12 = vmul.f32 %v1681_v26, %v703_v28 }
0x1a63   :  { %v705_v39 = vadd.f32 %v1681_v26, %v704_v12  ;;  %v1696_v12 = vld [vmem:[%s2334_s8] ss:$0 sm:$0xff]  ;;  %s1833_s8 = smov [#allocation11]  }
0x1a65   :  { %v709_v42 = vsel %vm708_vm3, %v1681_v26, %v705_v39 }
0x1a66   :  { %v714_v49 = vsel %vm711_vm4, %v713_v30, %v709_v42 }
0x1a67   :  { %v721_v50 = vmul.f32 %v719_v48, %v714_v49  ;;  %v728_v34 = vsub.f32 1.0, %v714_v49  ;;  %v734_v16 = vmul.f32 %v714_v49, %v2165_v36 }
0x1ac5   :  { %v1245_v35 = vpop.permute.xlu0 %1244 }
0x1ac6   :  { %v1247_v38 = vmul.f32 %v1245_v35, %v1242_v29 }
0x1ac8   :  { %v2270_v40 = vadd.f32 %v1248_v37, %v1247_v38 }
0x1aca   :  { %1251 = vrot.lane.b32.xlu1 %v2270_v40, %s1832_s4 }
0x1ad2   :  { %723 = vrot.lane.b32.xlu1 %v721_v50, %s1831_s3 }
0x1b3c   :  { %v1252_v51 = vpop.permute.xlu1 %1251 }
0x1b3d   :  { %1254 = vst.msk [vmem:[#allocation3 + $0x28] sm:$0xff] %vm187_vm1, %v1252_v51  ;;  %1565 = vmatmul.msk.f32.vlgmr.msra.gmra.mxu1 %vm187_vm1, %v1252_v51 }
0x1b44   :  { %v724_v57 = vpop.permute.xlu1 %723  ;;  %v1398_v37 = vld [vmem:[#allocation3 + $0x28] sm:$0xff] }
0x1b45   :  { %1571 = vmatmul.msk.f32.vlgmr.msrb.gmra.mxu1 %vm187_vm1, %v1395_v52  ;;  %v726_v59 = vadd.f32 %v724_v57, %v695_v21 }
0x1b47   :  { %1682 = vtanh.f32 %v726_v59 }
0x1b4d   :  { %1572 = vmatmul.msk.f32.gmra.mxu1 %vm187_vm1, %v1396_v53  ;;  %v1683_v63 = vpop.eup %1682 }
0x1b55   :  { %1573 = vmatmul.msk.f32.gmra.mxu1 %vm187_vm1, %v1397_v55 }
0x1bba   :  { %v1274_v60 = vpop.f32.mrf.mxu1 }
0x1bbb   :  { %v1298_v61 = vadd.f32 %v1274_v60, %v2152_v43  ;;  %v1278_v5 = vadd.f32 %v1277_v4, %v1274_v60 }
0x1bbd   :  { %1300 = vrot.lane.b32.xlu0 %v1298_v61, %s1831_s3  ;;  %v1566_v6 = vmul.f32 -1.442695, %v1278_v5 }
0x1bbf   :  { %1684 = vpow2.f32 %v1566_v6 }
0x1bc2   :  { %v1456_v62 = vpop.f32.mrf.mxu1 }
0x1bc3   :  { %v1457_v9 = vadd.f32 %v2208_v54, %v1456_v62 }
0x1bc5   :  { %1476 = vst [vmem:[#allocation10 + $0x10] sm:$0xff] %v1457_v9  ;;  %730 = vrot.lane.b32.xlu0 %v1683_v63, %s1832_s4  ;;  %v1685_v7 = vpop.eup %1684 }
0x1bc6   :  { %v1282_v56 = vadd.f32 1.0, %v1685_v7 }
0x1bc8   :  { %1686 = vrcp.f32 %v1282_v56  ;;  %v1294_v13 = vand.u32 2147483648, %v1282_v56  ;;  %vm1288_vm6 = vweird.f32 %v1282_v56  ;;  %v1292_v45 = vand.u32 2147483647, %v1282_v56 }
0x1bca   :  { %v1459_v0 = vpop.f32.mrf.mxu1  ;;  %v1295_v46 = vor.u32 1.1754944e-38, %v1294_v13  ;;  %vm1293_vm8 = vcmp.eq.f32.partialorder %v1292_v45, 8.507059e+37 }
0x1bcb   :  { %v1460_v1 = vadd.f32 %v2208_v54, %v1459_v0 }
0x1bcd   :  { %1477 = vst [vmem:[#allocation10 + $0x18] sm:$0xff] %v1460_v1 }
0x1bce   :  { %v1687_v8 = vpop.eup %1686 }
0x1bcf   :  { %v1284_v10 = vmul.f32 %v1687_v8, %v1282_v56  ;;  %vm1289_vm5 = vweird.f32 %v1687_v8 }
0x1bd0   :  { %vm1290_vm7 = vmor %vm1288_vm6, %vm1289_vm5 }
0x1bd1   :  { %v1285_v11 = vsub.f32 1.0, %v1284_v10 }
0x1bd2   :  { %v1462_v2 = vpop.f32.mrf.mxu1 }
0x1bd3   :  { %v1463_v3 = vadd.f32 %v2208_v54, %v1462_v2  ;;  %v1286_v31 = vmul.f32 %v1687_v8, %v1285_v11 }
0x1bd5   :  { %1478 = vst [vmem:[#allocation10 + $0x20] sm:$0xff] %v1463_v3  ;;  %v1287_v44 = vadd.f32 %v1687_v8, %v1286_v31 }
0x1bd7   :  { %v1291_v32 = vsel %vm1290_vm7, %v1687_v8, %v1287_v44 }
0x1bd8   :  { %v1296_v14 = vsel %vm1293_vm8, %v1295_v46, %v1291_v32 }
0x1bd9   :  { %v1310_v24 = vsub.f32 1.0, %v1296_v14  ;;  %v1316_v25 = vmul.f32 %v1296_v14, %v2270_v40 }
0x1c2f   :  { %v1301_v47 = vpop.permute.xlu0 %1300 }
0x1c30   :  { %v1303_v33 = vmul.f32 %v1301_v47, %v1296_v14 }
0x1c32   :  { %1305 = vrot.lane.b32.xlu2 %v1303_v33, %s1831_s3 }
0x1c37   :  { %v731_v15 = vpop.permute.xlu0 %730 }
0x1c38   :  { %v733_v17 = vmul.f32 %v731_v15, %v728_v34 }
0x1c3a   :  { %v735_v18 = vadd.f32 %v734_v16, %v733_v17 }
0x1c3c   :  { %737 = vrot.lane.b32.xlu2 %v735_v18, %s1832_s4 }
0x1c8c   :  { %v1306_v19 = vpop.permute.xlu2 %1305 }
0x1c8d   :  { %v1308_v20 = vadd.f32 %v1306_v19, %v1277_v4 }
0x1c8f   :  { %1688 = vtanh.f32 %v1308_v20 }
0x1c95   :  { %v1689_v21 = vpop.eup %1688 }
0x1c96   :  { %1312 = vrot.lane.b32.xlu1 %v1689_v21, %s1832_s4  ;;  %v738_v22 = vpop.permute.xlu2 %737 }
0x1c97   :  { %740 = vst.msk [vmem:[#allocation3 + $0x38] sm:$0xff] %vm187_vm1, %v738_v22 }
0x1c98   :  { %741 = vst.msk [vmem:[#allocation11] sm:$0xff] %vm187_vm1, %v738_v22 }
0x1c9e   :  { %v749_v23 = vld [vmem:[#allocation3 + $0x38] sm:$0xff] }
0x1c9f   :  { %1551 = vmatmul.msk.f32.gmra.mxu3 %vm187_vm1, %v749_v23 }
0x1d08   :  { %v1313_v36 = vpop.permute.xlu1 %1312 }
0x1d09   :  { %v1315_v26 = vmul.f32 %v1313_v36, %v1310_v24 }
0x1d0b   :  { %v1317_v27 = vadd.f32 %v1316_v25, %v1315_v26 }
0x1d0d   :  { %1319 = vrot.lane.b32.xlu0 %v1317_v27, %s1832_s4 }
0x1d22   :  { %v820_v28 = vpop.f32.mrf.mxu3 }
0x1d23   :  { %v821_v29 = vadd.f32 %v1696_v12, %v820_v28 }
0x1d25   :  { %830 = vst.msk [vmem:[#allocation2 + $0x38] sm:$0xff] %vm172_vm2, %v821_v29 }
0x1d2c   :  { %v1345_v48 = vld [vmem:[#allocation2 + $0x38] sm:$0xff] }
0x1d7f   :  { %v1320_v35 = vpop.permute.xlu0 %1319 }
0x1d80   :  { %1322 = vst.msk [vmem:[#allocation3 + $0x30] sm:$0xff] %vm187_vm1, %v1320_v35  ;;  %1567 = vmatmul.msk.f32.vlgmr.msra.gmra.mxu2 %vm187_vm1, %v1320_v35 }
0x1d87   :  { %v1399_v38 = vld [vmem:[#allocation3 + $0x30] sm:$0xff] }
0x1d88   :  { %1574 = vmatmul.msk.f32.vlgmr.msrb.gmra.mxu2 %vm187_vm1, %v1398_v37 }
0x1d90   :  { %1575 = vmatmul.msk.f32.gmra.mxu2 %vm187_vm1, %v1399_v38 }
0x1e03   :  { %v1342_v39 = vpop.f32.mrf.mxu2 }
0x1e04   :  { %v1366_v40 = vadd.f32 %v1342_v39, %v2152_v43  ;;  %v1346_v49 = vadd.f32 %v1345_v48, %v1342_v39 }
0x1e06   :  { %1368 = vrot.lane.b32.xlu1 %v1366_v40, %s1831_s3  ;;  %v1568_v50 = vmul.f32 -1.442695, %v1346_v49 }
0x1e08   :  { %1690 = vpow2.f32 %v1568_v50 }
0x1e0b   :  { %v1465_v41 = vpop.f32.mrf.mxu2 }
0x1e0c   :  { %v1466_v58 = vadd.f32 %v2208_v54, %v1465_v41 }
0x1e0e   :  { %1479 = vst [vmem:[#allocation10 + $0x28] sm:$0xff] %v1466_v58  ;;  %v1691_v51 = vpop.eup %1690 }
0x1e0f   :  { %v1350_v52 = vadd.f32 1.0, %v1691_v51 }
0x1e11   :  { %1692 = vrcp.f32 %v1350_v52  ;;  %v1362_v60 = vand.u32 2147483648, %v1350_v52  ;;  %vm1356_vm0 = vweird.f32 %v1350_v52  ;;  %v1360_v61 = vand.u32 2147483647, %v1350_v52 }
0x1e13   :  { %v1468_v42 = vpop.f32.mrf.mxu2  ;;  %v1363_v9 = vor.u32 1.1754944e-38, %v1362_v60  ;;  %vm1361_vm10 = vcmp.eq.f32.partialorder %v1360_v61, 8.507059e+37 }
0x1e14   :  { %v1469_v30 = vadd.f32 %v2208_v54, %v1468_v42 }
0x1e16   :  { %1480 = vst [vmem:[#allocation10 + $0x30] sm:$0xff] %v1469_v30 }
0x1e17   :  { %v1693_v53 = vpop.eup %1692 }
0x1e18   :  { %v1352_v55 = vmul.f32 %v1693_v53, %v1350_v52  ;;  %vm1357_vm2 = vweird.f32 %v1693_v53 }
0x1e19   :  { %vm1358_vm9 = vmor %vm1356_vm0, %vm1357_vm2 }
0x1e1a   :  { %v1353_v43 = vsub.f32 1.0, %v1352_v55 }
0x1e1c   :  { %v1354_v57 = vmul.f32 %v1693_v53, %v1353_v43 }
0x1e1e   :  { %v1355_v59 = vadd.f32 %v1693_v53, %v1354_v57 }
0x1e20   :  { %v1359_v62 = vsel %vm1358_vm9, %v1693_v53, %v1355_v59 }
0x1e21   :  { %v1364_v0 = vsel %vm1361_vm10, %v1363_v9, %v1359_v62 }
0x1e22   :  { %v1378_v5 = vsub.f32 1.0, %v1364_v0  ;;  %v1384_v7 = vmul.f32 %v1364_v0, %v1317_v27 }
0x1e78   :  { %v1369_v63 = vpop.permute.xlu1 %1368 }
0x1e79   :  { %v1371_v1 = vmul.f32 %v1369_v63, %v1364_v0 }
0x1e7b   :  { %1373 = vrot.lane.b32.xlu2 %v1371_v1, %s1831_s3  ;;  %s1499_s3 = sshll.u32 %s1833_s8, 4  ;;  %s1500_s3 = int_to_ptr.vmem [resolvable:$true] %s1499_s3 }
0x1ed5   :  { %v1374_v2 = vpop.permute.xlu2 %1373 }
0x1ed6   :  { %v1376_v3 = vadd.f32 %v1374_v2, %v1345_v48 }
0x1ed8   :  { %1694 = vtanh.f32 %v1376_v3 }
0x1ede   :  { %v1695_v4 = vpop.eup %1694 }
0x1edf   :  { %1380 = vrot.lane.b32.xlu0 %v1695_v4, %s1832_s4 }
0x1f51   :  { %v1381_v6 = vpop.permute.xlu0 %1380 }
0x1f52   :  { %v1383_v56 = vmul.f32 %v1381_v6, %v1378_v5 }
0x1f54   :  { %v1385_v8 = vadd.f32 %v1384_v7, %v1383_v56 }
0x1f56   :  { %1387 = vrot.lane.b32.xlu1 %v1385_v8, %s1832_s4  ;;  %s1834_s4 = smov [#allocation10]  }
0x1f57   :  { %s1486_s14 = sshll.u32 %s1834_s4, 4  ;;  %s1487_s14 = int_to_ptr.vmem [resolvable:$true] %s1486_s14 }
0x1fc8   :  { %v1388_v10 = vpop.permute.xlu1 %1387 }
0x1fc9   :  { %1390 = vst.msk [vmem:[#allocation3 + $0x38] sm:$0xff] %vm187_vm1, %v1388_v10 }
0x1fca   :  { %1392 = vst.msk [vmem:[#allocation11 + $0x8] sm:$0xff] %vm187_vm1, %v1388_v10 }
0x1fcb   :  { %1507 = dma.vmem_to_hbm [thread:$0]  %s1500_s3, 256, %s1502_s30, [#allocation12], %s1826_s16, %s1826_s16, %s1827_s17  }
0x1fd0   :  { %v1400_v11 = vld [vmem:[#allocation3 + $0x38] sm:$0xff] }
0x1fd1   :  { %1576 = vmatmul.msk.f32.gmra.mxu2 %vm187_vm1, %v1400_v11 }
0x2054   :  { %v1471_v31 = vpop.f32.mrf.mxu2 }
0x2055   :  { %v1472_v44 = vadd.f32 %v2208_v54, %v1471_v31 }
0x2057   :  { %1481 = vst [vmem:[#allocation10 + $0x38] sm:$0xff] %v1472_v44 }
0x2058   :  { %1494 = dma.vmem_to_hbm [thread:$0]  %s1487_s14, 1024, %s1489_s19, [#allocation6], %s1826_s16, %s1826_s16, %s1827_s17  }
0x2059   :  { %1821 = dma.done.wait [#allocation6], 1024  }
0x205a   :  { %1822 = vsyncadd [#allocation6], 4294966272 }
0x205b   :  { %1823 = dma.done.wait [#allocation12], 256  }
0x205c   :  { %1824 = vsyncadd [#allocation12], 4294967040 }
0x205d   :  { %1516 = vsyncpa [#allocation5], 1 }
0x205e   :  { %1517 = vsyncpa [#allocation8], 1 }
0x205f   :  { %1518 = vsyncpa [#allocation6], 1 }
0x2060   :  { %1519 = vsyncpa [#allocation12], 1 }

</bundles_post_ra>
